<compile_context>
chip_gen: v5e
topology: v5e:2x2
jax: 0.10.0
libtpu: 0.0.40
codegen_flags: <defaults>
</compile_context>

<pallas_src>
from functools import partial

import jax
import jax.numpy as jnp
from jax import lax
from jax.experimental import pallas as pl
from jax.experimental.pallas import tpu as pltpu


def _pick_batch_tile(n, target):
  """Largest divisor of n that is <= target, preferring an even number of grid
  steps so the batch axis can split evenly across v7x's 2 TensorCores."""
  best, best_even = 1, None
  for bt in range(1, min(target, n) + 1):
    if n % bt == 0:
      best = bt
      if (n // bt) % 2 == 0:
        best_even = bt
  return best_even if best_even is not None else best


@partial(jax.jit, static_argnames=("stride", "batch_tile"))
def group_conv(x_nchw, weight, bias, *, stride=1, batch_tile=4):
  """Depthwise conv2d, PyTorch semantics: x [N,C,H,W], weight [C,1,K,K], bias [C]."""
  N, C, H, W = x_nchw.shape
  K = weight.shape[-1]
  P = K // 2
  Hp = H + 2 * P
  H_out = (H + 2 * P - K) // stride + 1
  W_out = (W + 2 * P - K) // stride + 1
  WC = W_out * C                      # packed lane width (128 at the test shapes)
  bt = _pick_batch_tile(N, batch_tile)

  # ---- wrapper-side packing: lane-dense, dx pre-shifted, column-strided ----
  # TODO(synk): keep activations in this packed layout across adjacent layers
  # (and fold the zero-pad into the producer) so these transposes/pads are not
  # extra full-activation HBM round trips.
  x_nhwc = jnp.transpose(x_nchw, (0, 2, 3, 1))                   # [N,H,W,C]
  x_pad = jnp.pad(x_nhwc, ((0, 0), (P, P), (P, P), (0, 0)))      # [N,Hp,Wp,C]
  last_col = (W_out - 1) * stride + 1
  # One lane-aligned slab per horizontal tap offset dx; output-column stride is
  # folded in, so kernel lanes already correspond to output columns.
  x_shift = jnp.stack(
      [x_pad[:, :, dx:dx + last_col:stride, :].reshape(N, Hp, WC)
       for dx in range(K)], axis=0)                              # [K,N,Hp,WC]

  # Tap-major per-channel weights tiled across output columns (lane = j*C + c),
  # pre-broadcast over the sublane (row) axis so the kernel only does plain
  # vector loads — no in-kernel sublane broadcasts.
  w_taps = weight.reshape(C, K * K).T.astype(jnp.float32)        # [K*K, C], tap = dy*K+dx
  w_rows = jnp.tile(w_taps, (1, W_out))                          # [K*K, WC]
  w_full = jnp.broadcast_to(w_rows[:, None, :], (K * K, Hp, WC)) # [K*K, Hp, WC]
  b_rows = jnp.tile(bias.reshape(1, C).astype(jnp.float32), (1, W_out))  # [1, WC]
  b_full = jnp.broadcast_to(b_rows, (H_out, WC))                 # [H_out, WC]

  def kernel(x_ref, w_ref, b_ref, o_ref):
    # x_ref: [K, bt, Hp, WC]   pre-shifted, lane-aligned slabs (one per dx)
    # w_ref: [K*K, Hp, WC]     per-tap weights, pre-broadcast over rows
    # b_ref: [H_out, WC]       bias, pre-broadcast over rows
    # o_ref: [bt, H_out, WC]
    acc = jnp.zeros((bt, H_out, WC), jnp.float32) + b_ref[...]
    if stride == 1:
      # dy-outer restructure: one full-height partial per dy, then a single
      # unaligned sublane-window slice -> K (not K*K) XLU extractions.
      for dy in range(K):
        part = None
        for dx in range(K):
          term = x_ref[dx] * w_ref[dy * K + dx]        # (bt,Hp,WC) * (Hp,WC)
          part = term if part is None else part + term
        acc = acc + part[:, dy:dy + H_out, :]
      o_ref[...] = acc.astype(o_ref.dtype)
    else:
      # Strided rows are read directly from the ref, so only the needed output
      # rows are computed and stored (no stride-1 superset + XLA subsample).
      for dy in range(K):
        for dx in range(K):
          col = x_ref[dx, :, pl.ds(dy, H_out, stride=stride), :]  # [bt,H_out,WC]
          acc = acc + col * w_ref[dy * K + dx, 0:H_out, :]
      o_ref[...] = acc.astype(o_ref.dtype)

  out_packed = pl.pallas_call(
      kernel,
      out_shape=jax.ShapeDtypeStruct((N, H_out, WC), x_nchw.dtype),
      grid_spec=pltpu.PrefetchScalarGridSpec(
          num_scalar_prefetch=0,
          grid=(N // bt,),
          in_specs=[
              pl.BlockSpec((K, bt, Hp, WC), lambda n: (0, n, 0, 0)),  # activations
              pl.BlockSpec((K * K, Hp, WC), lambda n: (0, 0, 0)),     # weights (repl.)
              pl.BlockSpec((H_out, WC), lambda n: (0, 0)),            # bias (repl.)
          ],
          out_specs=pl.BlockSpec((bt, H_out, WC), lambda n: (n, 0, 0)),
      ),
      compiler_params=pltpu.CompilerParams(
          dimension_semantics=("parallel",)),                        # batch independent
  )(x_shift, w_full, b_full)

  return out_packed.reshape(N, H_out, W_out, C).transpose(0, 3, 1, 2)


# ---------------------- pure-JAX reference (for checking) ----------------------
def group_conv_reference(x_nchw, weight, bias, *, stride=1):
  C = x_nchw.shape[1]
  K = weight.shape[-1]
  P = K // 2
  y = lax.conv_general_dilated(
      x_nchw, weight, window_strides=(stride, stride),
      padding=[(P, P), (P, P)],
      dimension_numbers=("NCHW", "OIHW", "NCHW"),
      feature_group_count=C)
  return y + bias.reshape(1, C, 1, 1)


if __name__ == "__main__":
  N, C, H, W = 2, 8, 16, 16      # dim = 8; W*C = 128 -> lane-dense packing
  K = 7
  stride = 1

  key = jax.random.PRNGKey(0)
  kx, kw, kb = jax.random.split(key, 3)
  x = jax.random.normal(kx, (N, C, H, W), jnp.float32)
  weight = 0.1 * jax.random.normal(kw, (C, 1, K, K), jnp.float32)   # PyTorch layout
  bias = 0.1 * jax.random.normal(kb, (C,), jnp.float32)

  out = jax.block_until_ready(group_conv(x, weight, bias, stride=stride))
  ref = jax.block_until_ready(group_conv_reference(x, weight, bias, stride=stride))

  assert out.shape == ref.shape and out.dtype == ref.dtype
  err = float(jnp.max(jnp.abs(out - ref)))
  if err > 1e-3:
    raise AssertionError(f"kernel mismatch vs reference: max abs err = {err}")
  print("KERNEL_OK")
</pallas_src>

<mosaic_0001>
module attributes {stable_mosaic.version = 11 : i64} {
  func.func @kernel(%arg0: i32, %arg1: memref<7x1x22x128xf32, #tpu.memory_space<vmem>>, %arg2: memref<49x22x128xf32, #tpu.memory_space<vmem>>, %arg3: memref<16x128xf32, #tpu.memory_space<vmem>>, %arg4: memref<1x16x128xf32, #tpu.memory_space<vmem>>) attributes {dimension_semantics = [#tpu.dimension_semantics<parallel>], iteration_bounds = array<i64: 2>, scalar_prefetch = 0 : i64, scratch_operands = 0 : i64, tpu.core_type = #tpu.core_type<tc>, window_params = [{transform_indices = @transform_0, window_bounds = array<i64: 7, 1, 22, 128>}, {pipeline_mode = #tpu.pipeline_mode<synchronous>, transform_indices = @transform_1, window_bounds = array<i64: 49, 22, 128>}, {pipeline_mode = #tpu.pipeline_mode<synchronous>, transform_indices = @transform_2, window_bounds = array<i64: 16, 128>}, {transform_indices = @transform_3, window_bounds = array<i64: 1, 16, 128>}]} {
    %cst = arith.constant 0.000000e+00 : f32
    %0 = vector.broadcast %cst : f32 to vector<1x16x128xf32>
    %c0 = arith.constant 0 : index
    %c0_0 = arith.constant 0 : index
    %1 = vector.load %arg3[%c0, %c0_0] : memref<16x128xf32, #tpu.memory_space<vmem>>, vector<16x128xf32>
    %2 = vector.shape_cast %1 : vector<16x128xf32> to vector<1x16x128xf32>
    %3 = arith.addf %0, %2 : vector<1x16x128xf32>
    %c0_1 = arith.constant 0 : index
    %c0_2 = arith.constant 0 : index
    %c0_3 = arith.constant 0 : index
    %c0_4 = arith.constant 0 : index
    %4 = vector.load %arg1[%c0_1, %c0_2, %c0_3, %c0_4] : memref<7x1x22x128xf32, #tpu.memory_space<vmem>>, vector<1x1x22x128xf32>
    %5 = vector.shape_cast %4 : vector<1x1x22x128xf32> to vector<1x22x128xf32>
    %c0_5 = arith.constant 0 : index
    %c0_6 = arith.constant 0 : index
    %c0_7 = arith.constant 0 : index
    %6 = vector.load %arg2[%c0_5, %c0_6, %c0_7] : memref<49x22x128xf32, #tpu.memory_space<vmem>>, vector<1x22x128xf32>
    %7 = vector.shape_cast %6 : vector<1x22x128xf32> to vector<22x128xf32>
    %8 = vector.shape_cast %7 : vector<22x128xf32> to vector<1x22x128xf32>
    %9 = arith.mulf %5, %8 : vector<1x22x128xf32>
    %c1 = arith.constant 1 : index
    %c0_8 = arith.constant 0 : index
    %c0_9 = arith.constant 0 : index
    %c0_10 = arith.constant 0 : index
    %10 = vector.load %arg1[%c1, %c0_8, %c0_9, %c0_10] : memref<7x1x22x128xf32, #tpu.memory_space<vmem>>, vector<1x1x22x128xf32>
    %11 = vector.shape_cast %10 : vector<1x1x22x128xf32> to vector<1x22x128xf32>
    %c1_11 = arith.constant 1 : index
    %c0_12 = arith.constant 0 : index
    %c0_13 = arith.constant 0 : index
    %12 = vector.load %arg2[%c1_11, %c0_12, %c0_13] : memref<49x22x128xf32, #tpu.memory_space<vmem>>, vector<1x22x128xf32>
    %13 = vector.shape_cast %12 : vector<1x22x128xf32> to vector<22x128xf32>
    %14 = vector.shape_cast %13 : vector<22x128xf32> to vector<1x22x128xf32>
    %15 = arith.mulf %11, %14 : vector<1x22x128xf32>
    %16 = arith.addf %9, %15 : vector<1x22x128xf32>
    %c2 = arith.constant 2 : index
    %c0_14 = arith.constant 0 : index
    %c0_15 = arith.constant 0 : index
    %c0_16 = arith.constant 0 : index
    %17 = vector.load %arg1[%c2, %c0_14, %c0_15, %c0_16] : memref<7x1x22x128xf32, #tpu.memory_space<vmem>>, vector<1x1x22x128xf32>
    %18 = vector.shape_cast %17 : vector<1x1x22x128xf32> to vector<1x22x128xf32>
    %c2_17 = arith.constant 2 : index
    %c0_18 = arith.constant 0 : index
    %c0_19 = arith.constant 0 : index
    %19 = vector.load %arg2[%c2_17, %c0_18, %c0_19] : memref<49x22x128xf32, #tpu.memory_space<vmem>>, vector<1x22x128xf32>
    %20 = vector.shape_cast %19 : vector<1x22x128xf32> to vector<22x128xf32>
    %21 = vector.shape_cast %20 : vector<22x128xf32> to vector<1x22x128xf32>
    %22 = arith.mulf %18, %21 : vector<1x22x128xf32>
    %23 = arith.addf %16, %22 : vector<1x22x128xf32>
    %c3 = arith.constant 3 : index
    %c0_20 = arith.constant 0 : index
    %c0_21 = arith.constant 0 : index
    %c0_22 = arith.constant 0 : index
    %24 = vector.load %arg1[%c3, %c0_20, %c0_21, %c0_22] : memref<7x1x22x128xf32, #tpu.memory_space<vmem>>, vector<1x1x22x128xf32>
    %25 = vector.shape_cast %24 : vector<1x1x22x128xf32> to vector<1x22x128xf32>
    %c3_23 = arith.constant 3 : index
    %c0_24 = arith.constant 0 : index
    %c0_25 = arith.constant 0 : index
    %26 = vector.load %arg2[%c3_23, %c0_24, %c0_25] : memref<49x22x128xf32, #tpu.memory_space<vmem>>, vector<1x22x128xf32>
    %27 = vector.shape_cast %26 : vector<1x22x128xf32> to vector<22x128xf32>
    %28 = vector.shape_cast %27 : vector<22x128xf32> to vector<1x22x128xf32>
    %29 = arith.mulf %25, %28 : vector<1x22x128xf32>
    %30 = arith.addf %23, %29 : vector<1x22x128xf32>
    %c4 = arith.constant 4 : index
    %c0_26 = arith.constant 0 : index
    %c0_27 = arith.constant 0 : index
    %c0_28 = arith.constant 0 : index
    %31 = vector.load %arg1[%c4, %c0_26, %c0_27, %c0_28] : memref<7x1x22x128xf32, #tpu.memory_space<vmem>>, vector<1x1x22x128xf32>
    %32 = vector.shape_cast %31 : vector<1x1x22x128xf32> to vector<1x22x128xf32>
    %c4_29 = arith.constant 4 : index
    %c0_30 = arith.constant 0 : index
    %c0_31 = arith.constant 0 : index
    %33 = vector.load %arg2[%c4_29, %c0_30, %c0_31] : memref<49x22x128xf32, #tpu.memory_space<vmem>>, vector<1x22x128xf32>
    %34 = vector.shape_cast %33 : vector<1x22x128xf32> to vector<22x128xf32>
    %35 = vector.shape_cast %34 : vector<22x128xf32> to vector<1x22x128xf32>
    %36 = arith.mulf %32, %35 : vector<1x22x128xf32>
    %37 = arith.addf %30, %36 : vector<1x22x128xf32>
    %c5 = arith.constant 5 : index
    %c0_32 = arith.constant 0 : index
    %c0_33 = arith.constant 0 : index
    %c0_34 = arith.constant 0 : index
    %38 = vector.load %arg1[%c5, %c0_32, %c0_33, %c0_34] : memref<7x1x22x128xf32, #tpu.memory_space<vmem>>, vector<1x1x22x128xf32>
    %39 = vector.shape_cast %38 : vector<1x1x22x128xf32> to vector<1x22x128xf32>
    %c5_35 = arith.constant 5 : index
    %c0_36 = arith.constant 0 : index
    %c0_37 = arith.constant 0 : index
    %40 = vector.load %arg2[%c5_35, %c0_36, %c0_37] : memref<49x22x128xf32, #tpu.memory_space<vmem>>, vector<1x22x128xf32>
    %41 = vector.shape_cast %40 : vector<1x22x128xf32> to vector<22x128xf32>
    %42 = vector.shape_cast %41 : vector<22x128xf32> to vector<1x22x128xf32>
    %43 = arith.mulf %39, %42 : vector<1x22x128xf32>
    %44 = arith.addf %37, %43 : vector<1x22x128xf32>
    %c6 = arith.constant 6 : index
    %c0_38 = arith.constant 0 : index
    %c0_39 = arith.constant 0 : index
    %c0_40 = arith.constant 0 : index
    %45 = vector.load %arg1[%c6, %c0_38, %c0_39, %c0_40] : memref<7x1x22x128xf32, #tpu.memory_space<vmem>>, vector<1x1x22x128xf32>
    %46 = vector.shape_cast %45 : vector<1x1x22x128xf32> to vector<1x22x128xf32>
    %c6_41 = arith.constant 6 : index
    %c0_42 = arith.constant 0 : index
    %c0_43 = arith.constant 0 : index
    %47 = vector.load %arg2[%c6_41, %c0_42, %c0_43] : memref<49x22x128xf32, #tpu.memory_space<vmem>>, vector<1x22x128xf32>
    %48 = vector.shape_cast %47 : vector<1x22x128xf32> to vector<22x128xf32>
    %49 = vector.shape_cast %48 : vector<22x128xf32> to vector<1x22x128xf32>
    %50 = arith.mulf %46, %49 : vector<1x22x128xf32>
    %51 = arith.addf %44, %50 : vector<1x22x128xf32>
    %52 = vector.extract_strided_slice %51 {offsets = [0, 0, 0], sizes = [1, 16, 128], strides = [1, 1, 1]} : vector<1x22x128xf32> to vector<1x16x128xf32>
    %53 = arith.addf %3, %52 : vector<1x16x128xf32>
    %c0_44 = arith.constant 0 : index
    %c0_45 = arith.constant 0 : index
    %c0_46 = arith.constant 0 : index
    %c0_47 = arith.constant 0 : index
    %54 = vector.load %arg1[%c0_44, %c0_45, %c0_46, %c0_47] : memref<7x1x22x128xf32, #tpu.memory_space<vmem>>, vector<1x1x22x128xf32>
    %55 = vector.shape_cast %54 : vector<1x1x22x128xf32> to vector<1x22x128xf32>
    %c7 = arith.constant 7 : index
    %c0_48 = arith.constant 0 : index
    %c0_49 = arith.constant 0 : index
    %56 = vector.load %arg2[%c7, %c0_48, %c0_49] : memref<49x22x128xf32, #tpu.memory_space<vmem>>, vector<1x22x128xf32>
    %57 = vector.shape_cast %56 : vector<1x22x128xf32> to vector<22x128xf32>
    %58 = vector.shape_cast %57 : vector<22x128xf32> to vector<1x22x128xf32>
    %59 = arith.mulf %55, %58 : vector<1x22x128xf32>
    %c1_50 = arith.constant 1 : index
    %c0_51 = arith.constant 0 : index
    %c0_52 = arith.constant 0 : index
    %c0_53 = arith.constant 0 : index
    %60 = vector.load %arg1[%c1_50, %c0_51, %c0_52, %c0_53] : memref<7x1x22x128xf32, #tpu.memory_space<vmem>>, vector<1x1x22x128xf32>
    %61 = vector.shape_cast %60 : vector<1x1x22x128xf32> to vector<1x22x128xf32>
    %c8 = arith.constant 8 : index
    %c0_54 = arith.constant 0 : index
    %c0_55 = arith.constant 0 : index
    %62 = vector.load %arg2[%c8, %c0_54, %c0_55] : memref<49x22x128xf32, #tpu.memory_space<vmem>>, vector<1x22x128xf32>
    %63 = vector.shape_cast %62 : vector<1x22x128xf32> to vector<22x128xf32>
    %64 = vector.shape_cast %63 : vector<22x128xf32> to vector<1x22x128xf32>
    %65 = arith.mulf %61, %64 : vector<1x22x128xf32>
    %66 = arith.addf %59, %65 : vector<1x22x128xf32>
    %c2_56 = arith.constant 2 : index
    %c0_57 = arith.constant 0 : index
    %c0_58 = arith.constant 0 : index
    %c0_59 = arith.constant 0 : index
    %67 = vector.load %arg1[%c2_56, %c0_57, %c0_58, %c0_59] : memref<7x1x22x128xf32, #tpu.memory_space<vmem>>, vector<1x1x22x128xf32>
    %68 = vector.shape_cast %67 : vector<1x1x22x128xf32> to vector<1x22x128xf32>
    %c9 = arith.constant 9 : index
    %c0_60 = arith.constant 0 : index
    %c0_61 = arith.constant 0 : index
    %69 = vector.load %arg2[%c9, %c0_60, %c0_61] : memref<49x22x128xf32, #tpu.memory_space<vmem>>, vector<1x22x128xf32>
    %70 = vector.shape_cast %69 : vector<1x22x128xf32> to vector<22x128xf32>
    %71 = vector.shape_cast %70 : vector<22x128xf32> to vector<1x22x128xf32>
    %72 = arith.mulf %68, %71 : vector<1x22x128xf32>
    %73 = arith.addf %66, %72 : vector<1x22x128xf32>
    %c3_62 = arith.constant 3 : index
    %c0_63 = arith.constant 0 : index
    %c0_64 = arith.constant 0 : index
    %c0_65 = arith.constant 0 : index
    %74 = vector.load %arg1[%c3_62, %c0_63, %c0_64, %c0_65] : memref<7x1x22x128xf32, #tpu.memory_space<vmem>>, vector<1x1x22x128xf32>
    %75 = vector.shape_cast %74 : vector<1x1x22x128xf32> to vector<1x22x128xf32>
    %c10 = arith.constant 10 : index
    %c0_66 = arith.constant 0 : index
    %c0_67 = arith.constant 0 : index
    %76 = vector.load %arg2[%c10, %c0_66, %c0_67] : memref<49x22x128xf32, #tpu.memory_space<vmem>>, vector<1x22x128xf32>
    %77 = vector.shape_cast %76 : vector<1x22x128xf32> to vector<22x128xf32>
    %78 = vector.shape_cast %77 : vector<22x128xf32> to vector<1x22x128xf32>
    %79 = arith.mulf %75, %78 : vector<1x22x128xf32>
    %80 = arith.addf %73, %79 : vector<1x22x128xf32>
    %c4_68 = arith.constant 4 : index
    %c0_69 = arith.constant 0 : index
    %c0_70 = arith.constant 0 : index
    %c0_71 = arith.constant 0 : index
    %81 = vector.load %arg1[%c4_68, %c0_69, %c0_70, %c0_71] : memref<7x1x22x128xf32, #tpu.memory_space<vmem>>, vector<1x1x22x128xf32>
    %82 = vector.shape_cast %81 : vector<1x1x22x128xf32> to vector<1x22x128xf32>
    %c11 = arith.constant 11 : index
    %c0_72 = arith.constant 0 : index
    %c0_73 = arith.constant 0 : index
    %83 = vector.load %arg2[%c11, %c0_72, %c0_73] : memref<49x22x128xf32, #tpu.memory_space<vmem>>, vector<1x22x128xf32>
    %84 = vector.shape_cast %83 : vector<1x22x128xf32> to vector<22x128xf32>
    %85 = vector.shape_cast %84 : vector<22x128xf32> to vector<1x22x128xf32>
    %86 = arith.mulf %82, %85 : vector<1x22x128xf32>
    %87 = arith.addf %80, %86 : vector<1x22x128xf32>
    %c5_74 = arith.constant 5 : index
    %c0_75 = arith.constant 0 : index
    %c0_76 = arith.constant 0 : index
    %c0_77 = arith.constant 0 : index
    %88 = vector.load %arg1[%c5_74, %c0_75, %c0_76, %c0_77] : memref<7x1x22x128xf32, #tpu.memory_space<vmem>>, vector<1x1x22x128xf32>
    %89 = vector.shape_cast %88 : vector<1x1x22x128xf32> to vector<1x22x128xf32>
    %c12 = arith.constant 12 : index
    %c0_78 = arith.constant 0 : index
    %c0_79 = arith.constant 0 : index
    %90 = vector.load %arg2[%c12, %c0_78, %c0_79] : memref<49x22x128xf32, #tpu.memory_space<vmem>>, vector<1x22x128xf32>
    %91 = vector.shape_cast %90 : vector<1x22x128xf32> to vector<22x128xf32>
    %92 = vector.shape_cast %91 : vector<22x128xf32> to vector<1x22x128xf32>
    %93 = arith.mulf %89, %92 : vector<1x22x128xf32>
    %94 = arith.addf %87, %93 : vector<1x22x128xf32>
    %c6_80 = arith.constant 6 : index
    %c0_81 = arith.constant 0 : index
    %c0_82 = arith.constant 0 : index
    %c0_83 = arith.constant 0 : index
    %95 = vector.load %arg1[%c6_80, %c0_81, %c0_82, %c0_83] : memref<7x1x22x128xf32, #tpu.memory_space<vmem>>, vector<1x1x22x128xf32>
    %96 = vector.shape_cast %95 : vector<1x1x22x128xf32> to vector<1x22x128xf32>
    %c13 = arith.constant 13 : index
    %c0_84 = arith.constant 0 : index
    %c0_85 = arith.constant 0 : index
    %97 = vector.load %arg2[%c13, %c0_84, %c0_85] : memref<49x22x128xf32, #tpu.memory_space<vmem>>, vector<1x22x128xf32>
    %98 = vector.shape_cast %97 : vector<1x22x128xf32> to vector<22x128xf32>
    %99 = vector.shape_cast %98 : vector<22x128xf32> to vector<1x22x128xf32>
    %100 = arith.mulf %96, %99 : vector<1x22x128xf32>
    %101 = arith.addf %94, %100 : vector<1x22x128xf32>
    %102 = vector.extract_strided_slice %101 {offsets = [0, 1, 0], sizes = [1, 16, 128], strides = [1, 1, 1]} : vector<1x22x128xf32> to vector<1x16x128xf32>
    %103 = arith.addf %53, %102 : vector<1x16x128xf32>
    %c0_86 = arith.constant 0 : index
    %c0_87 = arith.constant 0 : index
    %c0_88 = arith.constant 0 : index
    %c0_89 = arith.constant 0 : index
    %104 = vector.load %arg1[%c0_86, %c0_87, %c0_88, %c0_89] : memref<7x1x22x128xf32, #tpu.memory_space<vmem>>, vector<1x1x22x128xf32>
    %105 = vector.shape_cast %104 : vector<1x1x22x128xf32> to vector<1x22x128xf32>
    %c14 = arith.constant 14 : index
    %c0_90 = arith.constant 0 : index
    %c0_91 = arith.constant 0 : index
    %106 = vector.load %arg2[%c14, %c0_90, %c0_91] : memref<49x22x128xf32, #tpu.memory_space<vmem>>, vector<1x22x128xf32>
    %107 = vector.shape_cast %106 : vector<1x22x128xf32> to vector<22x128xf32>
    %108 = vector.shape_cast %107 : vector<22x128xf32> to vector<1x22x128xf32>
    %109 = arith.mulf %105, %108 : vector<1x22x128xf32>
    %c1_92 = arith.constant 1 : index
    %c0_93 = arith.constant 0 : index
    %c0_94 = arith.constant 0 : index
    %c0_95 = arith.constant 0 : index
    %110 = vector.load %arg1[%c1_92, %c0_93, %c0_94, %c0_95] : memref<7x1x22x128xf32, #tpu.memory_space<vmem>>, vector<1x1x22x128xf32>
    %111 = vector.shape_cast %110 : vector<1x1x22x128xf32> to vector<1x22x128xf32>
    %c15 = arith.constant 15 : index
    %c0_96 = arith.constant 0 : index
    %c0_97 = arith.constant 0 : index
    %112 = vector.load %arg2[%c15, %c0_96, %c0_97] : memref<49x22x128xf32, #tpu.memory_space<vmem>>, vector<1x22x128xf32>
    %113 = vector.shape_cast %112 : vector<1x22x128xf32> to vector<22x128xf32>
    %114 = vector.shape_cast %113 : vector<22x128xf32> to vector<1x22x128xf32>
    %115 = arith.mulf %111, %114 : vector<1x22x128xf32>
    %116 = arith.addf %109, %115 : vector<1x22x128xf32>
    %c2_98 = arith.constant 2 : index
    %c0_99 = arith.constant 0 : index
    %c0_100 = arith.constant 0 : index
    %c0_101 = arith.constant 0 : index
    %117 = vector.load %arg1[%c2_98, %c0_99, %c0_100, %c0_101] : memref<7x1x22x128xf32, #tpu.memory_space<vmem>>, vector<1x1x22x128xf32>
    %118 = vector.shape_cast %117 : vector<1x1x22x128xf32> to vector<1x22x128xf32>
    %c16 = arith.constant 16 : index
    %c0_102 = arith.constant 0 : index
    %c0_103 = arith.constant 0 : index
    %119 = vector.load %arg2[%c16, %c0_102, %c0_103] : memref<49x22x128xf32, #tpu.memory_space<vmem>>, vector<1x22x128xf32>
    %120 = vector.shape_cast %119 : vector<1x22x128xf32> to vector<22x128xf32>
    %121 = vector.shape_cast %120 : vector<22x128xf32> to vector<1x22x128xf32>
    %122 = arith.mulf %118, %121 : vector<1x22x128xf32>
    %123 = arith.addf %116, %122 : vector<1x22x128xf32>
    %c3_104 = arith.constant 3 : index
    %c0_105 = arith.constant 0 : index
    %c0_106 = arith.constant 0 : index
    %c0_107 = arith.constant 0 : index
    %124 = vector.load %arg1[%c3_104, %c0_105, %c0_106, %c0_107] : memref<7x1x22x128xf32, #tpu.memory_space<vmem>>, vector<1x1x22x128xf32>
    %125 = vector.shape_cast %124 : vector<1x1x22x128xf32> to vector<1x22x128xf32>
    %c17 = arith.constant 17 : index
    %c0_108 = arith.constant 0 : index
    %c0_109 = arith.constant 0 : index
    %126 = vector.load %arg2[%c17, %c0_108, %c0_109] : memref<49x22x128xf32, #tpu.memory_space<vmem>>, vector<1x22x128xf32>
    %127 = vector.shape_cast %126 : vector<1x22x128xf32> to vector<22x128xf32>
    %128 = vector.shape_cast %127 : vector<22x128xf32> to vector<1x22x128xf32>
    %129 = arith.mulf %125, %128 : vector<1x22x128xf32>
    %130 = arith.addf %123, %129 : vector<1x22x128xf32>
    %c4_110 = arith.constant 4 : index
    %c0_111 = arith.constant 0 : index
    %c0_112 = arith.constant 0 : index
    %c0_113 = arith.constant 0 : index
    %131 = vector.load %arg1[%c4_110, %c0_111, %c0_112, %c0_113] : memref<7x1x22x128xf32, #tpu.memory_space<vmem>>, vector<1x1x22x128xf32>
    %132 = vector.shape_cast %131 : vector<1x1x22x128xf32> to vector<1x22x128xf32>
    %c18 = arith.constant 18 : index
    %c0_114 = arith.constant 0 : index
    %c0_115 = arith.constant 0 : index
    %133 = vector.load %arg2[%c18, %c0_114, %c0_115] : memref<49x22x128xf32, #tpu.memory_space<vmem>>, vector<1x22x128xf32>
    %134 = vector.shape_cast %133 : vector<1x22x128xf32> to vector<22x128xf32>
    %135 = vector.shape_cast %134 : vector<22x128xf32> to vector<1x22x128xf32>
    %136 = arith.mulf %132, %135 : vector<1x22x128xf32>
    %137 = arith.addf %130, %136 : vector<1x22x128xf32>
    %c5_116 = arith.constant 5 : index
    %c0_117 = arith.constant 0 : index
    %c0_118 = arith.constant 0 : index
    %c0_119 = arith.constant 0 : index
    %138 = vector.load %arg1[%c5_116, %c0_117, %c0_118, %c0_119] : memref<7x1x22x128xf32, #tpu.memory_space<vmem>>, vector<1x1x22x128xf32>
    %139 = vector.shape_cast %138 : vector<1x1x22x128xf32> to vector<1x22x128xf32>
    %c19 = arith.constant 19 : index
    %c0_120 = arith.constant 0 : index
    %c0_121 = arith.constant 0 : index
    %140 = vector.load %arg2[%c19, %c0_120, %c0_121] : memref<49x22x128xf32, #tpu.memory_space<vmem>>, vector<1x22x128xf32>
    %141 = vector.shape_cast %140 : vector<1x22x128xf32> to vector<22x128xf32>
    %142 = vector.shape_cast %141 : vector<22x128xf32> to vector<1x22x128xf32>
    %143 = arith.mulf %139, %142 : vector<1x22x128xf32>
    %144 = arith.addf %137, %143 : vector<1x22x128xf32>
    %c6_122 = arith.constant 6 : index
    %c0_123 = arith.constant 0 : index
    %c0_124 = arith.constant 0 : index
    %c0_125 = arith.constant 0 : index
    %145 = vector.load %arg1[%c6_122, %c0_123, %c0_124, %c0_125] : memref<7x1x22x128xf32, #tpu.memory_space<vmem>>, vector<1x1x22x128xf32>
    %146 = vector.shape_cast %145 : vector<1x1x22x128xf32> to vector<1x22x128xf32>
    %c20 = arith.constant 20 : index
    %c0_126 = arith.constant 0 : index
    %c0_127 = arith.constant 0 : index
    %147 = vector.load %arg2[%c20, %c0_126, %c0_127] : memref<49x22x128xf32, #tpu.memory_space<vmem>>, vector<1x22x128xf32>
    %148 = vector.shape_cast %147 : vector<1x22x128xf32> to vector<22x128xf32>
    %149 = vector.shape_cast %148 : vector<22x128xf32> to vector<1x22x128xf32>
    %150 = arith.mulf %146, %149 : vector<1x22x128xf32>
    %151 = arith.addf %144, %150 : vector<1x22x128xf32>
    %152 = vector.extract_strided_slice %151 {offsets = [0, 2, 0], sizes = [1, 16, 128], strides = [1, 1, 1]} : vector<1x22x128xf32> to vector<1x16x128xf32>
    %153 = arith.addf %103, %152 : vector<1x16x128xf32>
    %c0_128 = arith.constant 0 : index
    %c0_129 = arith.constant 0 : index
    %c0_130 = arith.constant 0 : index
    %c0_131 = arith.constant 0 : index
    %154 = vector.load %arg1[%c0_128, %c0_129, %c0_130, %c0_131] : memref<7x1x22x128xf32, #tpu.memory_space<vmem>>, vector<1x1x22x128xf32>
    %155 = vector.shape_cast %154 : vector<1x1x22x128xf32> to vector<1x22x128xf32>
    %c21 = arith.constant 21 : index
    %c0_132 = arith.constant 0 : index
    %c0_133 = arith.constant 0 : index
    %156 = vector.load %arg2[%c21, %c0_132, %c0_133] : memref<49x22x128xf32, #tpu.memory_space<vmem>>, vector<1x22x128xf32>
    %157 = vector.shape_cast %156 : vector<1x22x128xf32> to vector<22x128xf32>
    %158 = vector.shape_cast %157 : vector<22x128xf32> to vector<1x22x128xf32>
    %159 = arith.mulf %155, %158 : vector<1x22x128xf32>
    %c1_134 = arith.constant 1 : index
    %c0_135 = arith.constant 0 : index
    %c0_136 = arith.constant 0 : index
    %c0_137 = arith.constant 0 : index
    %160 = vector.load %arg1[%c1_134, %c0_135, %c0_136, %c0_137] : memref<7x1x22x128xf32, #tpu.memory_space<vmem>>, vector<1x1x22x128xf32>
    %161 = vector.shape_cast %160 : vector<1x1x22x128xf32> to vector<1x22x128xf32>
    %c22 = arith.constant 22 : index
    %c0_138 = arith.constant 0 : index
    %c0_139 = arith.constant 0 : index
    %162 = vector.load %arg2[%c22, %c0_138, %c0_139] : memref<49x22x128xf32, #tpu.memory_space<vmem>>, vector<1x22x128xf32>
    %163 = vector.shape_cast %162 : vector<1x22x128xf32> to vector<22x128xf32>
    %164 = vector.shape_cast %163 : vector<22x128xf32> to vector<1x22x128xf32>
    %165 = arith.mulf %161, %164 : vector<1x22x128xf32>
    %166 = arith.addf %159, %165 : vector<1x22x128xf32>
    %c2_140 = arith.constant 2 : index
    %c0_141 = arith.constant 0 : index
    %c0_142 = arith.constant 0 : index
    %c0_143 = arith.constant 0 : index
    %167 = vector.load %arg1[%c2_140, %c0_141, %c0_142, %c0_143] : memref<7x1x22x128xf32, #tpu.memory_space<vmem>>, vector<1x1x22x128xf32>
    %168 = vector.shape_cast %167 : vector<1x1x22x128xf32> to vector<1x22x128xf32>
    %c23 = arith.constant 23 : index
    %c0_144 = arith.constant 0 : index
    %c0_145 = arith.constant 0 : index
    %169 = vector.load %arg2[%c23, %c0_144, %c0_145] : memref<49x22x128xf32, #tpu.memory_space<vmem>>, vector<1x22x128xf32>
    %170 = vector.shape_cast %169 : vector<1x22x128xf32> to vector<22x128xf32>
    %171 = vector.shape_cast %170 : vector<22x128xf32> to vector<1x22x128xf32>
    %172 = arith.mulf %168, %171 : vector<1x22x128xf32>
    %173 = arith.addf %166, %172 : vector<1x22x128xf32>
    %c3_146 = arith.constant 3 : index
    %c0_147 = arith.constant 0 : index
    %c0_148 = arith.constant 0 : index
    %c0_149 = arith.constant 0 : index
    %174 = vector.load %arg1[%c3_146, %c0_147, %c0_148, %c0_149] : memref<7x1x22x128xf32, #tpu.memory_space<vmem>>, vector<1x1x22x128xf32>
    %175 = vector.shape_cast %174 : vector<1x1x22x128xf32> to vector<1x22x128xf32>
    %c24 = arith.constant 24 : index
    %c0_150 = arith.constant 0 : index
    %c0_151 = arith.constant 0 : index
    %176 = vector.load %arg2[%c24, %c0_150, %c0_151] : memref<49x22x128xf32, #tpu.memory_space<vmem>>, vector<1x22x128xf32>
    %177 = vector.shape_cast %176 : vector<1x22x128xf32> to vector<22x128xf32>
    %178 = vector.shape_cast %177 : vector<22x128xf32> to vector<1x22x128xf32>
    %179 = arith.mulf %175, %178 : vector<1x22x128xf32>
    %180 = arith.addf %173, %179 : vector<1x22x128xf32>
    %c4_152 = arith.constant 4 : index
    %c0_153 = arith.constant 0 : index
    %c0_154 = arith.constant 0 : index
    %c0_155 = arith.constant 0 : index
    %181 = vector.load %arg1[%c4_152, %c0_153, %c0_154, %c0_155] : memref<7x1x22x128xf32, #tpu.memory_space<vmem>>, vector<1x1x22x128xf32>
    %182 = vector.shape_cast %181 : vector<1x1x22x128xf32> to vector<1x22x128xf32>
    %c25 = arith.constant 25 : index
    %c0_156 = arith.constant 0 : index
    %c0_157 = arith.constant 0 : index
    %183 = vector.load %arg2[%c25, %c0_156, %c0_157] : memref<49x22x128xf32, #tpu.memory_space<vmem>>, vector<1x22x128xf32>
    %184 = vector.shape_cast %183 : vector<1x22x128xf32> to vector<22x128xf32>
    %185 = vector.shape_cast %184 : vector<22x128xf32> to vector<1x22x128xf32>
    %186 = arith.mulf %182, %185 : vector<1x22x128xf32>
    %187 = arith.addf %180, %186 : vector<1x22x128xf32>
    %c5_158 = arith.constant 5 : index
    %c0_159 = arith.constant 0 : index
    %c0_160 = arith.constant 0 : index
    %c0_161 = arith.constant 0 : index
    %188 = vector.load %arg1[%c5_158, %c0_159, %c0_160, %c0_161] : memref<7x1x22x128xf32, #tpu.memory_space<vmem>>, vector<1x1x22x128xf32>
    %189 = vector.shape_cast %188 : vector<1x1x22x128xf32> to vector<1x22x128xf32>
    %c26 = arith.constant 26 : index
    %c0_162 = arith.constant 0 : index
    %c0_163 = arith.constant 0 : index
    %190 = vector.load %arg2[%c26, %c0_162, %c0_163] : memref<49x22x128xf32, #tpu.memory_space<vmem>>, vector<1x22x128xf32>
    %191 = vector.shape_cast %190 : vector<1x22x128xf32> to vector<22x128xf32>
    %192 = vector.shape_cast %191 : vector<22x128xf32> to vector<1x22x128xf32>
    %193 = arith.mulf %189, %192 : vector<1x22x128xf32>
    %194 = arith.addf %187, %193 : vector<1x22x128xf32>
    %c6_164 = arith.constant 6 : index
    %c0_165 = arith.constant 0 : index
    %c0_166 = arith.constant 0 : index
    %c0_167 = arith.constant 0 : index
    %195 = vector.load %arg1[%c6_164, %c0_165, %c0_166, %c0_167] : memref<7x1x22x128xf32, #tpu.memory_space<vmem>>, vector<1x1x22x128xf32>
    %196 = vector.shape_cast %195 : vector<1x1x22x128xf32> to vector<1x22x128xf32>
    %c27 = arith.constant 27 : index
    %c0_168 = arith.constant 0 : index
    %c0_169 = arith.constant 0 : index
    %197 = vector.load %arg2[%c27, %c0_168, %c0_169] : memref<49x22x128xf32, #tpu.memory_space<vmem>>, vector<1x22x128xf32>
    %198 = vector.shape_cast %197 : vector<1x22x128xf32> to vector<22x128xf32>
    %199 = vector.shape_cast %198 : vector<22x128xf32> to vector<1x22x128xf32>
    %200 = arith.mulf %196, %199 : vector<1x22x128xf32>
    %201 = arith.addf %194, %200 : vector<1x22x128xf32>
    %202 = vector.extract_strided_slice %201 {offsets = [0, 3, 0], sizes = [1, 16, 128], strides = [1, 1, 1]} : vector<1x22x128xf32> to vector<1x16x128xf32>
    %203 = arith.addf %153, %202 : vector<1x16x128xf32>
    %c0_170 = arith.constant 0 : index
    %c0_171 = arith.constant 0 : index
    %c0_172 = arith.constant 0 : index
    %c0_173 = arith.constant 0 : index
    %204 = vector.load %arg1[%c0_170, %c0_171, %c0_172, %c0_173] : memref<7x1x22x128xf32, #tpu.memory_space<vmem>>, vector<1x1x22x128xf32>
    %205 = vector.shape_cast %204 : vector<1x1x22x128xf32> to vector<1x22x128xf32>
    %c28 = arith.constant 28 : index
    %c0_174 = arith.constant 0 : index
    %c0_175 = arith.constant 0 : index
    %206 = vector.load %arg2[%c28, %c0_174, %c0_175] : memref<49x22x128xf32, #tpu.memory_space<vmem>>, vector<1x22x128xf32>
    %207 = vector.shape_cast %206 : vector<1x22x128xf32> to vector<22x128xf32>
    %208 = vector.shape_cast %207 : vector<22x128xf32> to vector<1x22x128xf32>
    %209 = arith.mulf %205, %208 : vector<1x22x128xf32>
    %c1_176 = arith.constant 1 : index
    %c0_177 = arith.constant 0 : index
    %c0_178 = arith.constant 0 : index
    %c0_179 = arith.constant 0 : index
    %210 = vector.load %arg1[%c1_176, %c0_177, %c0_178, %c0_179] : memref<7x1x22x128xf32, #tpu.memory_space<vmem>>, vector<1x1x22x128xf32>
    %211 = vector.shape_cast %210 : vector<1x1x22x128xf32> to vector<1x22x128xf32>
    %c29 = arith.constant 29 : index
    %c0_180 = arith.constant 0 : index
    %c0_181 = arith.constant 0 : index
    %212 = vector.load %arg2[%c29, %c0_180, %c0_181] : memref<49x22x128xf32, #tpu.memory_space<vmem>>, vector<1x22x128xf32>
    %213 = vector.shape_cast %212 : vector<1x22x128xf32> to vector<22x128xf32>
    %214 = vector.shape_cast %213 : vector<22x128xf32> to vector<1x22x128xf32>
    %215 = arith.mulf %211, %214 : vector<1x22x128xf32>
    %216 = arith.addf %209, %215 : vector<1x22x128xf32>
    %c2_182 = arith.constant 2 : index
    %c0_183 = arith.constant 0 : index
    %c0_184 = arith.constant 0 : index
    %c0_185 = arith.constant 0 : index
    %217 = vector.load %arg1[%c2_182, %c0_183, %c0_184, %c0_185] : memref<7x1x22x128xf32, #tpu.memory_space<vmem>>, vector<1x1x22x128xf32>
    %218 = vector.shape_cast %217 : vector<1x1x22x128xf32> to vector<1x22x128xf32>
    %c30 = arith.constant 30 : index
    %c0_186 = arith.constant 0 : index
    %c0_187 = arith.constant 0 : index
    %219 = vector.load %arg2[%c30, %c0_186, %c0_187] : memref<49x22x128xf32, #tpu.memory_space<vmem>>, vector<1x22x128xf32>
    %220 = vector.shape_cast %219 : vector<1x22x128xf32> to vector<22x128xf32>
    %221 = vector.shape_cast %220 : vector<22x128xf32> to vector<1x22x128xf32>
    %222 = arith.mulf %218, %221 : vector<1x22x128xf32>
    %223 = arith.addf %216, %222 : vector<1x22x128xf32>
    %c3_188 = arith.constant 3 : index
    %c0_189 = arith.constant 0 : index
    %c0_190 = arith.constant 0 : index
    %c0_191 = arith.constant 0 : index
    %224 = vector.load %arg1[%c3_188, %c0_189, %c0_190, %c0_191] : memref<7x1x22x128xf32, #tpu.memory_space<vmem>>, vector<1x1x22x128xf32>
    %225 = vector.shape_cast %224 : vector<1x1x22x128xf32> to vector<1x22x128xf32>
    %c31 = arith.constant 31 : index
    %c0_192 = arith.constant 0 : index
    %c0_193 = arith.constant 0 : index
    %226 = vector.load %arg2[%c31, %c0_192, %c0_193] : memref<49x22x128xf32, #tpu.memory_space<vmem>>, vector<1x22x128xf32>
    %227 = vector.shape_cast %226 : vector<1x22x128xf32> to vector<22x128xf32>
    %228 = vector.shape_cast %227 : vector<22x128xf32> to vector<1x22x128xf32>
    %229 = arith.mulf %225, %228 : vector<1x22x128xf32>
    %230 = arith.addf %223, %229 : vector<1x22x128xf32>
    %c4_194 = arith.constant 4 : index
    %c0_195 = arith.constant 0 : index
    %c0_196 = arith.constant 0 : index
    %c0_197 = arith.constant 0 : index
    %231 = vector.load %arg1[%c4_194, %c0_195, %c0_196, %c0_197] : memref<7x1x22x128xf32, #tpu.memory_space<vmem>>, vector<1x1x22x128xf32>
    %232 = vector.shape_cast %231 : vector<1x1x22x128xf32> to vector<1x22x128xf32>
    %c32 = arith.constant 32 : index
    %c0_198 = arith.constant 0 : index
    %c0_199 = arith.constant 0 : index
    %233 = vector.load %arg2[%c32, %c0_198, %c0_199] : memref<49x22x128xf32, #tpu.memory_space<vmem>>, vector<1x22x128xf32>
    %234 = vector.shape_cast %233 : vector<1x22x128xf32> to vector<22x128xf32>
    %235 = vector.shape_cast %234 : vector<22x128xf32> to vector<1x22x128xf32>
    %236 = arith.mulf %232, %235 : vector<1x22x128xf32>
    %237 = arith.addf %230, %236 : vector<1x22x128xf32>
    %c5_200 = arith.constant 5 : index
    %c0_201 = arith.constant 0 : index
    %c0_202 = arith.constant 0 : index
    %c0_203 = arith.constant 0 : index
    %238 = vector.load %arg1[%c5_200, %c0_201, %c0_202, %c0_203] : memref<7x1x22x128xf32, #tpu.memory_space<vmem>>, vector<1x1x22x128xf32>
    %239 = vector.shape_cast %238 : vector<1x1x22x128xf32> to vector<1x22x128xf32>
    %c33 = arith.constant 33 : index
    %c0_204 = arith.constant 0 : index
    %c0_205 = arith.constant 0 : index
    %240 = vector.load %arg2[%c33, %c0_204, %c0_205] : memref<49x22x128xf32, #tpu.memory_space<vmem>>, vector<1x22x128xf32>
    %241 = vector.shape_cast %240 : vector<1x22x128xf32> to vector<22x128xf32>
    %242 = vector.shape_cast %241 : vector<22x128xf32> to vector<1x22x128xf32>
    %243 = arith.mulf %239, %242 : vector<1x22x128xf32>
    %244 = arith.addf %237, %243 : vector<1x22x128xf32>
    %c6_206 = arith.constant 6 : index
    %c0_207 = arith.constant 0 : index
    %c0_208 = arith.constant 0 : index
    %c0_209 = arith.constant 0 : index
    %245 = vector.load %arg1[%c6_206, %c0_207, %c0_208, %c0_209] : memref<7x1x22x128xf32, #tpu.memory_space<vmem>>, vector<1x1x22x128xf32>
    %246 = vector.shape_cast %245 : vector<1x1x22x128xf32> to vector<1x22x128xf32>
    %c34 = arith.constant 34 : index
    %c0_210 = arith.constant 0 : index
    %c0_211 = arith.constant 0 : index
    %247 = vector.load %arg2[%c34, %c0_210, %c0_211] : memref<49x22x128xf32, #tpu.memory_space<vmem>>, vector<1x22x128xf32>
    %248 = vector.shape_cast %247 : vector<1x22x128xf32> to vector<22x128xf32>
    %249 = vector.shape_cast %248 : vector<22x128xf32> to vector<1x22x128xf32>
    %250 = arith.mulf %246, %249 : vector<1x22x128xf32>
    %251 = arith.addf %244, %250 : vector<1x22x128xf32>
    %252 = vector.extract_strided_slice %251 {offsets = [0, 4, 0], sizes = [1, 16, 128], strides = [1, 1, 1]} : vector<1x22x128xf32> to vector<1x16x128xf32>
    %253 = arith.addf %203, %252 : vector<1x16x128xf32>
    %c0_212 = arith.constant 0 : index
    %c0_213 = arith.constant 0 : index
    %c0_214 = arith.constant 0 : index
    %c0_215 = arith.constant 0 : index
    %254 = vector.load %arg1[%c0_212, %c0_213, %c0_214, %c0_215] : memref<7x1x22x128xf32, #tpu.memory_space<vmem>>, vector<1x1x22x128xf32>
    %255 = vector.shape_cast %254 : vector<1x1x22x128xf32> to vector<1x22x128xf32>
    %c35 = arith.constant 35 : index
    %c0_216 = arith.constant 0 : index
    %c0_217 = arith.constant 0 : index
    %256 = vector.load %arg2[%c35, %c0_216, %c0_217] : memref<49x22x128xf32, #tpu.memory_space<vmem>>, vector<1x22x128xf32>
    %257 = vector.shape_cast %256 : vector<1x22x128xf32> to vector<22x128xf32>
    %258 = vector.shape_cast %257 : vector<22x128xf32> to vector<1x22x128xf32>
    %259 = arith.mulf %255, %258 : vector<1x22x128xf32>
    %c1_218 = arith.constant 1 : index
    %c0_219 = arith.constant 0 : index
    %c0_220 = arith.constant 0 : index
    %c0_221 = arith.constant 0 : index
    %260 = vector.load %arg1[%c1_218, %c0_219, %c0_220, %c0_221] : memref<7x1x22x128xf32, #tpu.memory_space<vmem>>, vector<1x1x22x128xf32>
    %261 = vector.shape_cast %260 : vector<1x1x22x128xf32> to vector<1x22x128xf32>
    %c36 = arith.constant 36 : index
    %c0_222 = arith.constant 0 : index
    %c0_223 = arith.constant 0 : index
    %262 = vector.load %arg2[%c36, %c0_222, %c0_223] : memref<49x22x128xf32, #tpu.memory_space<vmem>>, vector<1x22x128xf32>
    %263 = vector.shape_cast %262 : vector<1x22x128xf32> to vector<22x128xf32>
    %264 = vector.shape_cast %263 : vector<22x128xf32> to vector<1x22x128xf32>
    %265 = arith.mulf %261, %264 : vector<1x22x128xf32>
    %266 = arith.addf %259, %265 : vector<1x22x128xf32>
    %c2_224 = arith.constant 2 : index
    %c0_225 = arith.constant 0 : index
    %c0_226 = arith.constant 0 : index
    %c0_227 = arith.constant 0 : index
    %267 = vector.load %arg1[%c2_224, %c0_225, %c0_226, %c0_227] : memref<7x1x22x128xf32, #tpu.memory_space<vmem>>, vector<1x1x22x128xf32>
    %268 = vector.shape_cast %267 : vector<1x1x22x128xf32> to vector<1x22x128xf32>
    %c37 = arith.constant 37 : index
    %c0_228 = arith.constant 0 : index
    %c0_229 = arith.constant 0 : index
    %269 = vector.load %arg2[%c37, %c0_228, %c0_229] : memref<49x22x128xf32, #tpu.memory_space<vmem>>, vector<1x22x128xf32>
    %270 = vector.shape_cast %269 : vector<1x22x128xf32> to vector<22x128xf32>
    %271 = vector.shape_cast %270 : vector<22x128xf32> to vector<1x22x128xf32>
    %272 = arith.mulf %268, %271 : vector<1x22x128xf32>
    %273 = arith.addf %266, %272 : vector<1x22x128xf32>
    %c3_230 = arith.constant 3 : index
    %c0_231 = arith.constant 0 : index
    %c0_232 = arith.constant 0 : index
    %c0_233 = arith.constant 0 : index
    %274 = vector.load %arg1[%c3_230, %c0_231, %c0_232, %c0_233] : memref<7x1x22x128xf32, #tpu.memory_space<vmem>>, vector<1x1x22x128xf32>
    %275 = vector.shape_cast %274 : vector<1x1x22x128xf32> to vector<1x22x128xf32>
    %c38 = arith.constant 38 : index
    %c0_234 = arith.constant 0 : index
    %c0_235 = arith.constant 0 : index
    %276 = vector.load %arg2[%c38, %c0_234, %c0_235] : memref<49x22x128xf32, #tpu.memory_space<vmem>>, vector<1x22x128xf32>
    %277 = vector.shape_cast %276 : vector<1x22x128xf32> to vector<22x128xf32>
    %278 = vector.shape_cast %277 : vector<22x128xf32> to vector<1x22x128xf32>
    %279 = arith.mulf %275, %278 : vector<1x22x128xf32>
    %280 = arith.addf %273, %279 : vector<1x22x128xf32>
    %c4_236 = arith.constant 4 : index
    %c0_237 = arith.constant 0 : index
    %c0_238 = arith.constant 0 : index
    %c0_239 = arith.constant 0 : index
    %281 = vector.load %arg1[%c4_236, %c0_237, %c0_238, %c0_239] : memref<7x1x22x128xf32, #tpu.memory_space<vmem>>, vector<1x1x22x128xf32>
    %282 = vector.shape_cast %281 : vector<1x1x22x128xf32> to vector<1x22x128xf32>
    %c39 = arith.constant 39 : index
    %c0_240 = arith.constant 0 : index
    %c0_241 = arith.constant 0 : index
    %283 = vector.load %arg2[%c39, %c0_240, %c0_241] : memref<49x22x128xf32, #tpu.memory_space<vmem>>, vector<1x22x128xf32>
    %284 = vector.shape_cast %283 : vector<1x22x128xf32> to vector<22x128xf32>
    %285 = vector.shape_cast %284 : vector<22x128xf32> to vector<1x22x128xf32>
    %286 = arith.mulf %282, %285 : vector<1x22x128xf32>
    %287 = arith.addf %280, %286 : vector<1x22x128xf32>
    %c5_242 = arith.constant 5 : index
    %c0_243 = arith.constant 0 : index
    %c0_244 = arith.constant 0 : index
    %c0_245 = arith.constant 0 : index
    %288 = vector.load %arg1[%c5_242, %c0_243, %c0_244, %c0_245] : memref<7x1x22x128xf32, #tpu.memory_space<vmem>>, vector<1x1x22x128xf32>
    %289 = vector.shape_cast %288 : vector<1x1x22x128xf32> to vector<1x22x128xf32>
    %c40 = arith.constant 40 : index
    %c0_246 = arith.constant 0 : index
    %c0_247 = arith.constant 0 : index
    %290 = vector.load %arg2[%c40, %c0_246, %c0_247] : memref<49x22x128xf32, #tpu.memory_space<vmem>>, vector<1x22x128xf32>
    %291 = vector.shape_cast %290 : vector<1x22x128xf32> to vector<22x128xf32>
    %292 = vector.shape_cast %291 : vector<22x128xf32> to vector<1x22x128xf32>
    %293 = arith.mulf %289, %292 : vector<1x22x128xf32>
    %294 = arith.addf %287, %293 : vector<1x22x128xf32>
    %c6_248 = arith.constant 6 : index
    %c0_249 = arith.constant 0 : index
    %c0_250 = arith.constant 0 : index
    %c0_251 = arith.constant 0 : index
    %295 = vector.load %arg1[%c6_248, %c0_249, %c0_250, %c0_251] : memref<7x1x22x128xf32, #tpu.memory_space<vmem>>, vector<1x1x22x128xf32>
    %296 = vector.shape_cast %295 : vector<1x1x22x128xf32> to vector<1x22x128xf32>
    %c41 = arith.constant 41 : index
    %c0_252 = arith.constant 0 : index
    %c0_253 = arith.constant 0 : index
    %297 = vector.load %arg2[%c41, %c0_252, %c0_253] : memref<49x22x128xf32, #tpu.memory_space<vmem>>, vector<1x22x128xf32>
    %298 = vector.shape_cast %297 : vector<1x22x128xf32> to vector<22x128xf32>
    %299 = vector.shape_cast %298 : vector<22x128xf32> to vector<1x22x128xf32>
    %300 = arith.mulf %296, %299 : vector<1x22x128xf32>
    %301 = arith.addf %294, %300 : vector<1x22x128xf32>
    %302 = vector.extract_strided_slice %301 {offsets = [0, 5, 0], sizes = [1, 16, 128], strides = [1, 1, 1]} : vector<1x22x128xf32> to vector<1x16x128xf32>
    %303 = arith.addf %253, %302 : vector<1x16x128xf32>
    %c0_254 = arith.constant 0 : index
    %c0_255 = arith.constant 0 : index
    %c0_256 = arith.constant 0 : index
    %c0_257 = arith.constant 0 : index
    %304 = vector.load %arg1[%c0_254, %c0_255, %c0_256, %c0_257] : memref<7x1x22x128xf32, #tpu.memory_space<vmem>>, vector<1x1x22x128xf32>
    %305 = vector.shape_cast %304 : vector<1x1x22x128xf32> to vector<1x22x128xf32>
    %c42 = arith.constant 42 : index
    %c0_258 = arith.constant 0 : index
    %c0_259 = arith.constant 0 : index
    %306 = vector.load %arg2[%c42, %c0_258, %c0_259] : memref<49x22x128xf32, #tpu.memory_space<vmem>>, vector<1x22x128xf32>
    %307 = vector.shape_cast %306 : vector<1x22x128xf32> to vector<22x128xf32>
    %308 = vector.shape_cast %307 : vector<22x128xf32> to vector<1x22x128xf32>
    %309 = arith.mulf %305, %308 : vector<1x22x128xf32>
    %c1_260 = arith.constant 1 : index
    %c0_261 = arith.constant 0 : index
    %c0_262 = arith.constant 0 : index
    %c0_263 = arith.constant 0 : index
    %310 = vector.load %arg1[%c1_260, %c0_261, %c0_262, %c0_263] : memref<7x1x22x128xf32, #tpu.memory_space<vmem>>, vector<1x1x22x128xf32>
    %311 = vector.shape_cast %310 : vector<1x1x22x128xf32> to vector<1x22x128xf32>
    %c43 = arith.constant 43 : index
    %c0_264 = arith.constant 0 : index
    %c0_265 = arith.constant 0 : index
    %312 = vector.load %arg2[%c43, %c0_264, %c0_265] : memref<49x22x128xf32, #tpu.memory_space<vmem>>, vector<1x22x128xf32>
    %313 = vector.shape_cast %312 : vector<1x22x128xf32> to vector<22x128xf32>
    %314 = vector.shape_cast %313 : vector<22x128xf32> to vector<1x22x128xf32>
    %315 = arith.mulf %311, %314 : vector<1x22x128xf32>
    %316 = arith.addf %309, %315 : vector<1x22x128xf32>
    %c2_266 = arith.constant 2 : index
    %c0_267 = arith.constant 0 : index
    %c0_268 = arith.constant 0 : index
    %c0_269 = arith.constant 0 : index
    %317 = vector.load %arg1[%c2_266, %c0_267, %c0_268, %c0_269] : memref<7x1x22x128xf32, #tpu.memory_space<vmem>>, vector<1x1x22x128xf32>
    %318 = vector.shape_cast %317 : vector<1x1x22x128xf32> to vector<1x22x128xf32>
    %c44 = arith.constant 44 : index
    %c0_270 = arith.constant 0 : index
    %c0_271 = arith.constant 0 : index
    %319 = vector.load %arg2[%c44, %c0_270, %c0_271] : memref<49x22x128xf32, #tpu.memory_space<vmem>>, vector<1x22x128xf32>
    %320 = vector.shape_cast %319 : vector<1x22x128xf32> to vector<22x128xf32>
    %321 = vector.shape_cast %320 : vector<22x128xf32> to vector<1x22x128xf32>
    %322 = arith.mulf %318, %321 : vector<1x22x128xf32>
    %323 = arith.addf %316, %322 : vector<1x22x128xf32>
    %c3_272 = arith.constant 3 : index
    %c0_273 = arith.constant 0 : index
    %c0_274 = arith.constant 0 : index
    %c0_275 = arith.constant 0 : index
    %324 = vector.load %arg1[%c3_272, %c0_273, %c0_274, %c0_275] : memref<7x1x22x128xf32, #tpu.memory_space<vmem>>, vector<1x1x22x128xf32>
    %325 = vector.shape_cast %324 : vector<1x1x22x128xf32> to vector<1x22x128xf32>
    %c45 = arith.constant 45 : index
    %c0_276 = arith.constant 0 : index
    %c0_277 = arith.constant 0 : index
    %326 = vector.load %arg2[%c45, %c0_276, %c0_277] : memref<49x22x128xf32, #tpu.memory_space<vmem>>, vector<1x22x128xf32>
    %327 = vector.shape_cast %326 : vector<1x22x128xf32> to vector<22x128xf32>
    %328 = vector.shape_cast %327 : vector<22x128xf32> to vector<1x22x128xf32>
    %329 = arith.mulf %325, %328 : vector<1x22x128xf32>
    %330 = arith.addf %323, %329 : vector<1x22x128xf32>
    %c4_278 = arith.constant 4 : index
    %c0_279 = arith.constant 0 : index
    %c0_280 = arith.constant 0 : index
    %c0_281 = arith.constant 0 : index
    %331 = vector.load %arg1[%c4_278, %c0_279, %c0_280, %c0_281] : memref<7x1x22x128xf32, #tpu.memory_space<vmem>>, vector<1x1x22x128xf32>
    %332 = vector.shape_cast %331 : vector<1x1x22x128xf32> to vector<1x22x128xf32>
    %c46 = arith.constant 46 : index
    %c0_282 = arith.constant 0 : index
    %c0_283 = arith.constant 0 : index
    %333 = vector.load %arg2[%c46, %c0_282, %c0_283] : memref<49x22x128xf32, #tpu.memory_space<vmem>>, vector<1x22x128xf32>
    %334 = vector.shape_cast %333 : vector<1x22x128xf32> to vector<22x128xf32>
    %335 = vector.shape_cast %334 : vector<22x128xf32> to vector<1x22x128xf32>
    %336 = arith.mulf %332, %335 : vector<1x22x128xf32>
    %337 = arith.addf %330, %336 : vector<1x22x128xf32>
    %c5_284 = arith.constant 5 : index
    %c0_285 = arith.constant 0 : index
    %c0_286 = arith.constant 0 : index
    %c0_287 = arith.constant 0 : index
    %338 = vector.load %arg1[%c5_284, %c0_285, %c0_286, %c0_287] : memref<7x1x22x128xf32, #tpu.memory_space<vmem>>, vector<1x1x22x128xf32>
    %339 = vector.shape_cast %338 : vector<1x1x22x128xf32> to vector<1x22x128xf32>
    %c47 = arith.constant 47 : index
    %c0_288 = arith.constant 0 : index
    %c0_289 = arith.constant 0 : index
    %340 = vector.load %arg2[%c47, %c0_288, %c0_289] : memref<49x22x128xf32, #tpu.memory_space<vmem>>, vector<1x22x128xf32>
    %341 = vector.shape_cast %340 : vector<1x22x128xf32> to vector<22x128xf32>
    %342 = vector.shape_cast %341 : vector<22x128xf32> to vector<1x22x128xf32>
    %343 = arith.mulf %339, %342 : vector<1x22x128xf32>
    %344 = arith.addf %337, %343 : vector<1x22x128xf32>
    %c6_290 = arith.constant 6 : index
    %c0_291 = arith.constant 0 : index
    %c0_292 = arith.constant 0 : index
    %c0_293 = arith.constant 0 : index
    %345 = vector.load %arg1[%c6_290, %c0_291, %c0_292, %c0_293] : memref<7x1x22x128xf32, #tpu.memory_space<vmem>>, vector<1x1x22x128xf32>
    %346 = vector.shape_cast %345 : vector<1x1x22x128xf32> to vector<1x22x128xf32>
    %c48 = arith.constant 48 : index
    %c0_294 = arith.constant 0 : index
    %c0_295 = arith.constant 0 : index
    %347 = vector.load %arg2[%c48, %c0_294, %c0_295] : memref<49x22x128xf32, #tpu.memory_space<vmem>>, vector<1x22x128xf32>
    %348 = vector.shape_cast %347 : vector<1x22x128xf32> to vector<22x128xf32>
    %349 = vector.shape_cast %348 : vector<22x128xf32> to vector<1x22x128xf32>
    %350 = arith.mulf %346, %349 : vector<1x22x128xf32>
    %351 = arith.addf %344, %350 : vector<1x22x128xf32>
    %352 = vector.extract_strided_slice %351 {offsets = [0, 6, 0], sizes = [1, 16, 128], strides = [1, 1, 1]} : vector<1x22x128xf32> to vector<1x16x128xf32>
    %353 = arith.addf %303, %352 : vector<1x16x128xf32>
    %c0_296 = arith.constant 0 : index
    %c0_297 = arith.constant 0 : index
    %c0_298 = arith.constant 0 : index
    %354 = vector.load %arg4[%c0_296, %c0_297, %c0_298] : memref<1x16x128xf32, #tpu.memory_space<vmem>>, vector<1x16x128xf32>
    tpu.vector_store %arg4[%c0_296, %c0_297, %c0_298], %353 {strides = array<i32>} : memref<1x16x128xf32, #tpu.memory_space<vmem>>, vector<1x16x128xf32>,
    return
  }
  func.func @transform_0(%arg0: i32) -> (i32, i32, i32, i32) {
    %c0_i32 = arith.constant 0 : i32
    %c0_i32_0 = arith.constant 0 : i32
    %c0_i32_1 = arith.constant 0 : i32
    %c0_i32_2 = arith.constant 0 : i32
    return %c0_i32, %arg0, %c0_i32_0, %c0_i32_1 : i32, i32, i32, i32
  }
  func.func @transform_1(%arg0: i32) -> (i32, i32, i32) {
    %c0_i32 = arith.constant 0 : i32
    %c0_i32_0 = arith.constant 0 : i32
    %c0_i32_1 = arith.constant 0 : i32
    %c0_i32_2 = arith.constant 0 : i32
    return %c0_i32, %c0_i32_0, %c0_i32_1 : i32, i32, i32
  }
  func.func @transform_2(%arg0: i32) -> (i32, i32) {
    %c0_i32 = arith.constant 0 : i32
    %c0_i32_0 = arith.constant 0 : i32
    %c0_i32_1 = arith.constant 0 : i32
    return %c0_i32, %c0_i32_0 : i32, i32
  }
  func.func @transform_3(%arg0: i32) -> (i32, i32, i32) {
    %c0_i32 = arith.constant 0 : i32
    %c0_i32_0 = arith.constant 0 : i32
    %c0_i32_1 = arith.constant 0 : i32
    return %arg0, %c0_i32, %c0_i32_0 : i32, i32, i32
  }
}

</mosaic_0001>

<bundles_post_ra>
// kernel: group_conv.1
= control target key start
LH: loop header
LB: loop body
LE: loop exit
PB: predicated region body
PF: predicated region fallthrough
CT: control target
= control target key end

     0   :  { %s1147_s12 = smov 0   ;;  %s1149_s13 = smov 0   ;;  %s1939_s0 = inlined_call_operand.vmem [shape: f32[7,2,22,128], index: 0, kind: input, shape index: {}]   ;;  %s1940_s1 = inlined_call_operand.vmem [shape: f32[49,22,128], index: 1, kind: input, shape index: {}]   ;;  %s1941_s2 = inlined_call_operand.vmem [shape: f32[16,128], index: 2, kind: input, shape index: {}]   ;;  %s1942_s3 = inlined_call_operand.vmem [shape: f32[2,16,128], index: 3, kind: output, shape index: {}]  }
   0x1   :  { %s1151_s14 = smov 0  }
   0x2 LB: > { %s909_s15 = sadd.s32 4294967295, %s1125_s14   ;;  %s1164_s16 = sadd.s32 1, %s1125_s14   ;;  %s1125_s14 = sphi %s1151_s14, %s1946_s14   ;;  %s1121_s13 = sphi %s1149_s13, %s1945_s13   ;;  %s1117_s12 = sphi %s1147_s12, %s1944_s12  }
   0x3   : > { %s17_s17 = ssub.s32 %s1125_s14, %s1164_s16  ;;  %s20_s18 = sadd.s32 1, %s1121_s13 }
   0x4   : > { %p18_p0 = scmp.eq.s32.totalorder %s17_s17, 0  ;;  %p27_p1 = scmp.ne.s32.totalorder %s1121_s13, %s1117_s12 }
   0x5   : > { %p28_p2 = scmp.eq.s32.totalorder %s1125_s14, 0  ;;  %p912_p4 = scmp.ge.s32.totalorder %s1125_s14, 2 }
   0x6   : > { %s1173_s19 = scalar_select %p18_p0, %s1121_s13, %s20_s18  }
   0x7   : > { %p29_p3 = por %p28_p2, %p27_p1  ;;  %127 = sbr.rel (%p912_p4) target bundleno = 38 (0x26), region = 24 }
   0xc   : > { %130 = sbr.rel (!%p29_p3) target bundleno = 38 (0x26), region = 28  ;;  %s132_s20 = sand.u32 (%p29_p3), 1, %s1121_s13  }
   0xd   : > { %s1077_s21 = smul.u32 (%p29_p3), 24, %s1125_s14 }
   0xe   : > { %s1076_s22 = smul.u32 (%p29_p3), 168, %s132_s20 }
   0xf   : > { %s1181_s25 = scalar_lea.vmem (%p29_p3), %s1939_s0, %s1077_s21 }
  0x10   : > { %v206_v0 = vld [vmem:[%s1181_s25] sm:$0xff] (%p29_p3)  ;;  %v208_v1 = vld [vmem:[%s1181_s25 + $0x8] sm:$0xff] (%p29_p3)  ;;  %v210_v2 = vld [vmem:[%s1181_s25 + $0x10] sm:$0xff] (%p29_p3)  ;;  %s1186_s26 = scalar_lea.vmem (%p29_p3), [#allocation2], %s1076_s22 }
  0x11   : > { %207 = vst [vmem:[%s1186_s26] sm:$0xff] %v206_v0  ;;  %v212_v3 = vld [vmem:[%s1181_s25 + $0x30] sm:$0xff]  ;;  %v214_v4 = vld [vmem:[%s1181_s25 + $0x38] sm:$0xff]  ;;  %v216_v5 = vld [vmem:[%s1181_s25 + $0x40] sm:$0xff] }
  0x12   : > { %209 = vst [vmem:[%s1186_s26 + $0x8] sm:$0xff] %v208_v1  ;;  %v218_v6 = vld [vmem:[%s1181_s25 + $0x60] sm:$0xff]  ;;  %v220_v7 = vld [vmem:[%s1181_s25 + $0x68] sm:$0xff]  ;;  %v222_v8 = vld [vmem:[%s1181_s25 + $0x70] sm:$0xff] }
  0x13   : > { %211 = vst [vmem:[%s1186_s26 + $0x10] sm:$0xff] %v210_v2  ;;  %v224_v9 = vld [vmem:[%s1181_s25 + $0x90] sm:$0xff]  ;;  %v226_v10 = vld [vmem:[%s1181_s25 + $0x98] sm:$0xff]  ;;  %v228_v11 = vld [vmem:[%s1181_s25 + $0xa0] sm:$0xff] }
  0x14   : > { %213 = vst [vmem:[%s1186_s26 + $0x18] sm:$0xff] %v212_v3  ;;  %v230_v12 = vld [vmem:[%s1181_s25 + $0xc0] sm:$0xff]  ;;  %v232_v13 = vld [vmem:[%s1181_s25 + $0xc8] sm:$0xff]  ;;  %v234_v14 = vld [vmem:[%s1181_s25 + $0xd0] sm:$0xff] }
  0x15   : > { %215 = vst [vmem:[%s1186_s26 + $0x20] sm:$0xff] %v214_v4  ;;  %v236_v15 = vld [vmem:[%s1181_s25 + $0xf0] sm:$0xff]  ;;  %v238_v16 = vld [vmem:[%s1181_s25 + $0xf8] sm:$0xff]  ;;  %v240_v17 = vld [vmem:[%s1181_s25 + $0x100] sm:$0xff] }
  0x16   : > { %217 = vst [vmem:[%s1186_s26 + $0x28] sm:$0xff] %v216_v5  ;;  %v242_v18 = vld [vmem:[%s1181_s25 + $0x120] sm:$0xff]  ;;  %v244_v19 = vld [vmem:[%s1181_s25 + $0x128] sm:$0xff]  ;;  %v246_v20 = vld [vmem:[%s1181_s25 + $0x130] sm:$0xff] }
  0x17   : > { %219 = vst [vmem:[%s1186_s26 + $0x30] sm:$0xff] %v218_v6 }
  0x18   : > { %221 = vst [vmem:[%s1186_s26 + $0x38] sm:$0xff] %v220_v7 }
  0x19   : > { %223 = vst [vmem:[%s1186_s26 + $0x40] sm:$0xff] %v222_v8 }
  0x1a   : > { %225 = vst [vmem:[%s1186_s26 + $0x48] sm:$0xff] %v224_v9 }
  0x1b   : > { %227 = vst [vmem:[%s1186_s26 + $0x50] sm:$0xff] %v226_v10 }
  0x1c   : > { %229 = vst [vmem:[%s1186_s26 + $0x58] sm:$0xff] %v228_v11 }
  0x1d   : > { %231 = vst [vmem:[%s1186_s26 + $0x60] sm:$0xff] %v230_v12 }
  0x1e   : > { %233 = vst [vmem:[%s1186_s26 + $0x68] sm:$0xff] %v232_v13 }
  0x1f   : > { %235 = vst [vmem:[%s1186_s26 + $0x70] sm:$0xff] %v234_v14 }
  0x20   : > { %237 = vst [vmem:[%s1186_s26 + $0x78] sm:$0xff] %v236_v15 }
  0x21   : > { %239 = vst [vmem:[%s1186_s26 + $0x80] sm:$0xff] %v238_v16 }
  0x22   : > { %241 = vst [vmem:[%s1186_s26 + $0x88] sm:$0xff] %v240_v17 }
  0x23   : > { %243 = vst [vmem:[%s1186_s26 + $0x90] sm:$0xff] %v242_v18 }
  0x24   : > { %245 = vst [vmem:[%s1186_s26 + $0x98] sm:$0xff] %v244_v19 }
  0x25   : > { %247 = vst [vmem:[%s1186_s26 + $0xa0] sm:$0xff] %v246_v20 }
  0x26 PF: > { %p914_p5 = scmp.ge.s32.totalorder %s1125_s14, 1  ;;  %p252_p6 = scmp.lt.s32.totalorder %s1125_s14, 3 }
  0x28   : > { %p253_p7 = pnand %p914_p5, %p252_p6 }
  0x29   : > { %s259_s27 = sand.u32 (!%p253_p7), 1, %s1117_s12   ;;  %p1900_p8 = scmp.lt.s32.totalorder (!%p253_p7), %s909_s15, 1 }
  0x2a   : > { %256 = sbr.rel (%p253_p7) target bundleno = 137 (0x89), region = 66 }
  0x2b   : > { %s1078_s28 = smul.u32 (!%p253_p7), 168, %s259_s27 }
  0x2d   : > { %s1245_s12 = scalar_lea.vmem (!%p253_p7), [#allocation2], %s1078_s28 }
  0x2f   : > { %v294_v21 = vld [vmem:[%s1940_s1] sm:$0xff]  ;;  %v295_v22 = vld [vmem:[%s1940_s1 + $0x8] sm:$0xff]  ;;  %v920_v23 = vld [vmem:[%s1940_s1 + $0x18] sm:$0xff]  ;;  %vm436_vm0 = vcmask 1046528   ;;  %vm516_vm1 = vcmask 1045504   ;;  %vm596_vm2 = vcmask 1044480  }
  0x30   : > { %v921_v24 = vld [vmem:[%s1940_s1 + $0x20] sm:$0xff]  ;;  %v925_v25 = vld [vmem:[%s1940_s1 + $0x30] sm:$0xff]  ;;  %v926_v28 = vld [vmem:[%s1940_s1 + $0x38] sm:$0xff]  ;;  %vm676_vm3 = vcmask 1043456   ;;  %vm756_vm4 = vcmask 1042432   ;;  %s1948_s15 = smov (!%p1900_p8, %s909_s15), 1 }
  0x31   : > { %v1248_v26 = vld [vmem:[%s1245_s12] sm:$0xff]  ;;  %v1251_v27 = vld [vmem:[%s1245_s12 + $0x8] sm:$0xff]  ;;  %v1259_v31 = vld [vmem:[%s1245_s12 + $0x18] sm:$0xff]  ;;  %s1075_s4 = sshll.u32 %s1948_s15, 4  ;;  %vm836_vm5 = vcmask 1041408  }
  0x32   : > { %v296_v29 = vmul.f32 %v294_v21, %v1248_v26  ;;  %v297_v30 = vmul.f32 %v295_v22, %v1251_v27  ;;  %v1262_v32 = vld [vmem:[%s1245_s12 + $0x20] sm:$0xff]  ;;  %v305_v34 = vmul.f32 %v920_v23, %v1259_v31  ;;  %v1270_v36 = vld [vmem:[%s1245_s12 + $0x30] sm:$0xff]  ;;  %v1273_v37 = vld [vmem:[%s1245_s12 + $0x38] sm:$0xff]  ;;  %s286_s6 = scalar_lea.vmem %s1942_s3, %s1075_s4 }
  0x33   : > { %v930_v33 = vld [vmem:[%s1940_s1 + $0x48] sm:$0xff]  ;;  %v306_v35 = vmul.f32 %v921_v24, %v1262_v32  ;;  %v316_v38 = vmul.f32 %v925_v25, %v1270_v36  ;;  %v317_v42 = vmul.f32 %v926_v28, %v1273_v37  ;;  %v931_v43 = vld [vmem:[%s1940_s1 + $0x50] sm:$0xff]  ;;  %v935_v45 = vld [vmem:[%s1940_s1 + $0x60] sm:$0xff] }
  0x34   : > { %v1277_v39 = vld [vmem:[%s1245_s12 + $0x48] sm:$0xff]  ;;  %v307_v40 = vadd.f32 %v305_v34, %v296_v29  ;;  %v1291_v47 = vld [vmem:[%s1245_s12 + $0x10] sm:$0x3f]  ;;  %v1297_v49 = vld [vmem:[%s1245_s12 + $0x60] sm:$0xff] }
  0x35   : > { %v308_v41 = vadd.f32 %v306_v35, %v297_v30  ;;  %v327_v44 = vmul.f32 %v930_v33, %v1277_v39  ;;  %v936_v46 = vld [vmem:[%s1940_s1 + $0x68] sm:$0xff]  ;;  %v1294_v48 = vld [vmem:[%s1245_s12 + $0x50] sm:$0xff]  ;;  %v1306_v53 = vld [vmem:[%s1245_s12 + $0x78] sm:$0xff]  ;;  %v338_v61 = vmul.f32 %v935_v45, %v1297_v49 }
  0x36   : > { %v1300_v50 = vld [vmem:[%s1245_s12 + $0x28] sm:$0x3f]  ;;  %v318_v51 = vadd.f32 %v316_v38, %v307_v40  ;;  %v1309_v54 = vld [vmem:[%s1245_s12 + $0x80] sm:$0xff]  ;;  %v940_v55 = vld [vmem:[%s1940_s1 + $0x78] sm:$0xff]  ;;  %v328_v59 = vmul.f32 %v931_v43, %v1294_v48 }
  0x37   : > { %v1303_v52 = vld [vmem:[%s1245_s12 + $0x68] sm:$0xff]  ;;  %v941_v56 = vld [vmem:[%s1940_s1 + $0x80] sm:$0xff]  ;;  %v319_v58 = vadd.f32 %v317_v42, %v308_v41  ;;  %v1333_v2 = vld [vmem:[%s1245_s12 + $0x90] sm:$0xff]  ;;  %v349_v11 = vmul.f32 %v940_v55, %v1306_v53 }
  0x38   : > { %v1318_v57 = vld [vmem:[%s1245_s12 + $0x40] sm:$0x3f]  ;;  %v329_v60 = vadd.f32 %v327_v44, %v318_v51  ;;  %v948_v63 = vld [vmem:[%s1940_s1 + $0xb0] sm:$0xff]  ;;  %v1329_v0 = vld [vmem:[%s1245_s12 + $0x58] sm:$0x3f]  ;;  %v339_v1 = vmul.f32 %v936_v46, %v1303_v52  ;;  %v1357_v12 = vmul.f32 %v941_v56, %v1309_v54 }
  0x39   : > { %v947_v62 = vld [vmem:[%s1940_s1 + $0xa8] sm:$0xff]  ;;  %v1336_v3 = vld [vmem:[%s1245_s12 + $0x98] sm:$0xff]  ;;  %v945_v4 = vld [vmem:[%s1940_s1 + $0x90] sm:$0xff]  ;;  %v371_v8 = vmul.f32 %v948_v63, %v1251_v27  ;;  %v330_v25 = vadd.f32 %v328_v59, %v319_v58 }
  0x3a   : > { %v946_v5 = vld [vmem:[%s1940_s1 + $0x98] sm:$0xff]  ;;  %v370_v7 = vmul.f32 %v947_v62, %v1248_v26  ;;  %v950_v9 = vld [vmem:[%s1940_s1 + $0xc0] sm:$0xff]  ;;  %v951_v10 = vld [vmem:[%s1940_s1 + $0xc8] sm:$0xff]  ;;  %v340_v28 = vadd.f32 %v338_v61, %v329_v60  ;;  %v360_v46 = vmul.f32 %v945_v4, %v1333_v2 }
  0x3b   : > { %v949_v6 = vld [vmem:[%s1940_s1 + $0xb8] sm:$0x3f]  ;;  %v952_v14 = vld [vmem:[%s1940_s1 + $0xd0] sm:$0x3f]  ;;  %v377_v15 = vmul.f32 %v950_v9, %v1259_v31  ;;  %v954_v17 = vld [vmem:[%s1940_s1 + $0xe0] sm:$0xff]  ;;  %v378_v18 = vmul.f32 %v951_v10, %v1262_v32  ;;  %v1406_v51 = vmul.f32 %v946_v5, %v1336_v3 }
  0x3c   : > { %v372_v13 = vmul.f32 %v949_v6, %v1291_v47  ;;  %v953_v16 = vld [vmem:[%s1940_s1 + $0xd8] sm:$0xff]  ;;  %v379_v19 = vmul.f32 %v952_v14, %v1300_v50  ;;  %v955_v20 = vld [vmem:[%s1940_s1 + $0xe8] sm:$0x3f]  ;;  %v388_v22 = vmul.f32 %v954_v17, %v1273_v37  ;;  %v956_v23 = vld [vmem:[%s1940_s1 + $0xf0] sm:$0xff] }
  0x3d   : > { %v387_v21 = vmul.f32 %v953_v16, %v1270_v36  ;;  %v957_v24 = vld [vmem:[%s1940_s1 + $0xf8] sm:$0xff]  ;;  %v380_v29 = vadd.f32 %v377_v15, %v370_v7  ;;  %v389_v30 = vmul.f32 %v955_v20, %v1318_v57  ;;  %v958_v33 = vld [vmem:[%s1940_s1 + $0x100] sm:$0x3f]  ;;  %v959_v34 = vld [vmem:[%s1940_s1 + $0x108] sm:$0xff]  ;;  %v381_v40 = vadd.f32 %v378_v18, %v371_v8 }
  0x3e   : > { %v960_v35 = vld [vmem:[%s1940_s1 + $0x110] sm:$0xff]  ;;  %v382_v41 = vadd.f32 %v379_v19, %v372_v13  ;;  %v397_v42 = vmul.f32 %v956_v23, %v1277_v39  ;;  %v398_v43 = vmul.f32 %v957_v24, %v1294_v48  ;;  %v961_v44 = vld [vmem:[%s1940_s1 + $0x118] sm:$0x3f]  ;;  %v399_v56 = vmul.f32 %v958_v33, %v1329_v0  ;;  %v962_v58 = vld [vmem:[%s1940_s1 + $0x120] sm:$0xff] }
  0x3f   : > { %v1394_v38 = vld [vmem:[%s1245_s12 + $0x70] sm:$0x3f]  ;;  %v1402_v45 = vld [vmem:[%s1245_s12 + $0x88] sm:$0x3f]  ;;  %v390_v55 = vadd.f32 %v387_v21, %v380_v29  ;;  %v391_v60 = vadd.f32 %v388_v22, %v381_v40  ;;  %v407_v62 = vmul.f32 %v959_v34, %v1297_v49  ;;  %v408_v63 = vmul.f32 %v960_v35, %v1303_v52  ;;  %v966_v6 = vld [vmem:[%s1940_s1 + $0x140] sm:$0xff] }
  0x40   : > { %v963_v59 = vld [vmem:[%s1940_s1 + $0x128] sm:$0xff]  ;;  %v392_v61 = vadd.f32 %v389_v30, %v382_v41  ;;  %v964_v4 = vld [vmem:[%s1940_s1 + $0x130] sm:$0x3f]  ;;  %v965_v5 = vld [vmem:[%s1940_s1 + $0x138] sm:$0xff]  ;;  %v341_v7 = vadd.f32 %v339_v1, %v330_v25  ;;  %v351_v8 = vadd.f32 %v349_v11, %v340_v28  ;;  %v409_v13 = vmul.f32 %v961_v44, %v1394_v38 }
  0x41   : > { %v1427_v9 = vld [vmem:[%s1245_s12 + $0xa0] sm:$0x3f]  ;;  %v400_v10 = vadd.f32 %v397_v42, %v390_v55  ;;  %v968_v15 = vld [vmem:[%s1940_s1 + $0x150] sm:$0xff]  ;;  %v401_v16 = vadd.f32 %v398_v43, %v391_v60  ;;  %v417_v18 = vmul.f32 %v962_v58, %v1306_v53  ;;  %v418_v1 = vmul.f32 %v963_v59, %v1309_v54  ;;  %v969_v11 = vld [vmem:[%s1940_s1 + $0x158] sm:$0xff] }
  0x42   : > { %v967_v14 = vld [vmem:[%s1940_s1 + $0x148] sm:$0x3f]  ;;  %v402_v17 = vadd.f32 %v399_v56, %v392_v61  ;;  %v970_v19 = vld [vmem:[%s1940_s1 + $0x160] sm:$0x3f]  ;;  %v419_v22 = vmul.f32 %v964_v4, %v1402_v45  ;;  %v427_v23 = vmul.f32 %v965_v5, %v1333_v2  ;;  %v428_v24 = vmul.f32 %v966_v6, %v1336_v3  ;;  %v972_v25 = vld [vmem:[%s1940_s1 + $0x170] sm:$0xff] }
  0x43   : > { %v971_v20 = vld [vmem:[%s1940_s1 + $0x168] sm:$0xff]  ;;  %v410_v21 = vadd.f32 %v407_v62, %v400_v10  ;;  %v973_v28 = vld [vmem:[%s1940_s1 + $0x178] sm:$0x3f]  ;;  %v411_v29 = vadd.f32 %v408_v63, %v401_v16  ;;  %v429_v33 = vmul.f32 %v967_v14, %v1427_v9  ;;  %v450_v34 = vmul.f32 %v968_v15, %v1248_v26  ;;  %v974_v35 = vld [vmem:[%s1940_s1 + $0x180] sm:$0xff] }
  0x44   : > { %v412_v30 = vadd.f32 %v409_v13, %v402_v17  ;;  %v975_v40 = vld [vmem:[%s1940_s1 + $0x188] sm:$0xff]  ;;  %v451_v42 = vmul.f32 %v969_v11, %v1251_v27  ;;  %v452_v43 = vmul.f32 %v970_v19, %v1291_v47  ;;  %v457_v44 = vmul.f32 %v971_v20, %v1259_v31  ;;  %v976_v60 = vld [vmem:[%s1940_s1 + $0x190] sm:$0x3f]  ;;  %v977_v61 = vld [vmem:[%s1940_s1 + $0x198] sm:$0xff] }
  0x45   : > { %v420_v41 = vadd.f32 %v417_v18, %v410_v21  ;;  %v421_v55 = vadd.f32 %v418_v1, %v411_v29  ;;  %v458_v58 = vmul.f32 %v972_v25, %v1262_v32  ;;  %v459_v59 = vmul.f32 %v973_v28, %v1300_v50  ;;  %v978_v6 = vld [vmem:[%s1940_s1 + $0x1a0] sm:$0xff]  ;;  %v979_v16 = vld [vmem:[%s1940_s1 + $0x1a8] sm:$0x3f]  ;;  %v981_v1 = vld [vmem:[%s1940_s1 + $0x1b8] sm:$0xff] }
  0x46   : > { %v422_v56 = vadd.f32 %v419_v22, %v412_v30  ;;  %v352_v62 = vadd.f32 %v1357_v12, %v341_v7  ;;  %v460_v63 = vadd.f32 %v457_v44, %v450_v34  ;;  %v467_v4 = vmul.f32 %v974_v35, %v1270_v36  ;;  %v980_v12 = vld [vmem:[%s1940_s1 + $0x1b0] sm:$0xff]  ;;  %v287_v7 = vld [vmem:[%s1941_s2] sm:$0xff]  ;;  %v983_v28 = vld [vmem:[%s1940_s1 + $0x1c8] sm:$0xff] }
  0x47   : > { %v468_v5 = vmul.f32 %v975_v40, %v1273_v37  ;;  %v362_v10 = vadd.f32 %v360_v46, %v351_v8  ;;  %v430_v13 = vadd.f32 %v427_v23, %v420_v41  ;;  %v461_v14 = vadd.f32 %v458_v58, %v451_v42  ;;  %v982_v21 = vld [vmem:[%s1940_s1 + $0x1c0] sm:$0x3f]  ;;  %v984_v29 = vld [vmem:[%s1940_s1 + $0x1d0] sm:$0xff]  ;;  %v985_v40 = vld [vmem:[%s1940_s1 + $0x1d8] sm:$0x3f] }
  0x48   : > { %v462_v15 = vadd.f32 %v459_v59, %v452_v43  ;;  %v1490_v17 = vadd.f32 %v428_v24, %v421_v55  ;;  %v469_v18 = vmul.f32 %v976_v60, %v1318_v57  ;;  %v470_v46 = vadd.f32 %v467_v4, %v460_v63  ;;  %v986_v41 = vld [vmem:[%s1940_s1 + $0x1e0] sm:$0xff]  ;;  %v991_v63 = vld [vmem:[%s1940_s1 + $0x208] sm:$0x3f]  ;;  %v992_v4 = vld [vmem:[%s1940_s1 + $0x210] sm:$0xff] }
  0x49   : > { %v477_v8 = vmul.f32 %v977_v61, %v1277_v39  ;;  %v1497_v11 = vadd.f32 %v429_v33, %v422_v56  ;;  %v471_v19 = vadd.f32 %v468_v5, %v461_v14  ;;  %v478_v20 = vmul.f32 %v978_v6, %v1294_v48  ;;  %v989_v56 = vld [vmem:[%s1940_s1 + $0x1f8] sm:$0xff] }
  0x4a   : > { %v472_v22 = vadd.f32 %v469_v18, %v462_v15  ;;  %v479_v23 = vmul.f32 %v979_v16, %v1329_v0  ;;  %v487_v25 = vmul.f32 %v980_v12, %v1297_v49  ;;  %v363_v30 = vadd.f32 %v1406_v51, %v352_v62  ;;  %v987_v51 = vld [vmem:[%s1940_s1 + $0x1e8] sm:$0xff]  ;;  %v990_v62 = vld [vmem:[%s1940_s1 + $0x200] sm:$0xff]  ;;  %v993_v15 = vld [vmem:[%s1940_s1 + $0x218] sm:$0xff] }
  0x4b   : > { %v480_v24 = vadd.f32 %v477_v8, %v470_v46  ;;  %v364_v33 = vadd.f32 %v362_v10, %v287_v7  ;;  %v481_v34 = vadd.f32 %v478_v20, %v471_v19  ;;  %v488_v35 = vmul.f32 %v981_v1, %v1303_v52  ;;  %v994_v16 = vld [vmem:[%s1940_s1 + $0x220] sm:$0x3f]  ;;  %v995_v46 = vld [vmem:[%s1940_s1 + $0x228] sm:$0xff]  ;;  %v996_v8 = vld [vmem:[%s1940_s1 + $0x230] sm:$0xff] }
  0x4c   : > { %v437_v42 = vrot.slane %v430_v13, 1  ;;  %v438_v43 = vrot.slane %v1490_v17, 1  ;;  %v482_v44 = vadd.f32 %v479_v23, %v472_v22  ;;  %v489_v55 = vmul.f32 %v982_v21, %v1394_v38  ;;  %v988_v13 = vld [vmem:[%s1940_s1 + $0x1f0] sm:$0x3f]  ;;  %v288_v1 = vld [vmem:[%s1941_s2 + $0x8] sm:$0xff] }
  0x4d   : > { %v490_v58 = vadd.f32 %v487_v25, %v480_v24  ;;  %v491_v59 = vadd.f32 %v488_v35, %v481_v34  ;;  %v497_v60 = vmul.f32 %v983_v28, %v1306_v53  ;;  %v498_v61 = vmul.f32 %v984_v29, %v1309_v54  ;;  %v997_v28 = vld [vmem:[%s1940_s1 + $0x238] sm:$0x3f]  ;;  %v998_v29 = vld [vmem:[%s1940_s1 + $0x240] sm:$0xff] }
  0x4e   : > { %v440_v5 = vrot.slane %v1497_v11, 1  ;;  %v492_v6 = vadd.f32 %v489_v55, %v482_v44  ;;  %v499_v10 = vmul.f32 %v985_v40, %v1402_v45  ;;  %v507_v14 = vmul.f32 %v986_v41, %v1333_v2  ;;  %v1000_v44 = vld [vmem:[%s1940_s1 + $0x250] sm:$0x3f] }
  0x4f   : > { %v500_v12 = vadd.f32 %v497_v60, %v490_v58  ;;  %v501_v7 = vadd.f32 %v498_v61, %v491_v59  ;;  %v508_v17 = vmul.f32 %v987_v51, %v1336_v3  ;;  %v530_v18 = vmul.f32 %v989_v56, %v1248_v26 }
  0x50   : > { %v439_v11 = vsel %vm436_vm0, %v437_v42, %v438_v43  ;;  %v531_v19 = vmul.f32 %v990_v62, %v1251_v27  ;;  %v532_v20 = vmul.f32 %v991_v63, %v1291_v47  ;;  %v537_v21 = vmul.f32 %v992_v4, %v1259_v31  ;;  %v999_v42 = vld [vmem:[%s1940_s1 + $0x248] sm:$0xff]  ;;  %v1001_v63 = vld [vmem:[%s1940_s1 + $0x258] sm:$0xff] }
  0x51   : > { %v502_v22 = vadd.f32 %v499_v10, %v492_v6  ;;  %v509_v23 = vmul.f32 %v988_v13, %v1427_v9  ;;  %v538_v24 = vmul.f32 %v993_v15, %v1262_v32  ;;  %v539_v25 = vmul.f32 %v994_v16, %v1300_v50  ;;  %v1004_v13 = vld [vmem:[%s1940_s1 + $0x270] sm:$0xff] }
  0x52   : > { %v1574_v34 = vadd.f32 %v507_v14, %v500_v12  ;;  %v540_v35 = vadd.f32 %v537_v21, %v530_v18  ;;  %v547_v40 = vmul.f32 %v995_v46, %v1270_v36  ;;  %v548_v41 = vmul.f32 %v996_v8, %v1273_v37  ;;  %v1005_v14 = vld [vmem:[%s1940_s1 + $0x278] sm:$0xff] }
  0x53   : > { %v1584_v55 = vadd.f32 %v363_v30, %v288_v1  ;;  %v1586_v51 = vadd.f32 %v508_v17, %v501_v7  ;;  %v541_v56 = vadd.f32 %v538_v24, %v531_v19  ;;  %v542_v58 = vadd.f32 %v539_v25, %v532_v20  ;;  %v1002_v30 = vld [vmem:[%s1940_s1 + $0x260] sm:$0xff]  ;;  %v1007_v17 = vld [vmem:[%s1940_s1 + $0x288] sm:$0xff]  ;;  %v1009_v19 = vld [vmem:[%s1940_s1 + $0x298] sm:$0x3f] }
  0x54   : > { %v1589_v59 = vsel %vm436_vm0, %v438_v43, %v440_v5  ;;  %v549_v60 = vmul.f32 %v997_v28, %v1318_v57  ;;  %v550_v61 = vadd.f32 %v547_v40, %v540_v35  ;;  %v557_v62 = vmul.f32 %v998_v29, %v1277_v39  ;;  %v1003_v5 = vld [vmem:[%s1940_s1 + $0x268] sm:$0x3f]  ;;  %v1006_v7 = vld [vmem:[%s1940_s1 + $0x280] sm:$0x3f]  ;;  %v1012_v40 = vld [vmem:[%s1940_s1 + $0x2b0] sm:$0x3f] }
  0x55   : > { %v1599_v4 = vadd.f32 %v439_v11, %v364_v33  ;;  %v551_v6 = vadd.f32 %v548_v41, %v541_v56  ;;  %v558_v10 = vmul.f32 %v999_v42, %v1294_v48  ;;  %v559_v43 = vmul.f32 %v1000_v44, %v1329_v0  ;;  %v1008_v11 = vld [vmem:[%s1940_s1 + $0x290] sm:$0xff]  ;;  %v1010_v24 = vld [vmem:[%s1940_s1 + $0x2a0] sm:$0xff]  ;;  %v1011_v25 = vld [vmem:[%s1940_s1 + $0x2a8] sm:$0xff] }
  0x56   : > { %v512_v15 = vadd.f32 %v509_v23, %v502_v22  ;;  %v517_v33 = vrot.slane %v1574_v34, 2  ;;  %v552_v16 = vadd.f32 %v549_v60, %v542_v58  ;;  %v560_v12 = vadd.f32 %v557_v62, %v550_v61  ;;  %v1013_v41 = vld [vmem:[%s1940_s1 + $0x2b8] sm:$0xff]  ;;  %v1014_v42 = vld [vmem:[%s1940_s1 + $0x2c0] sm:$0xff]  ;;  %v1015_v60 = vld [vmem:[%s1940_s1 + $0x2c8] sm:$0x3f] }
  0x57   : > { %v518_v18 = vrot.slane %v1586_v51, 2  ;;  %v561_v46 = vadd.f32 %v558_v10, %v551_v6  ;;  %v567_v8 = vmul.f32 %v1001_v63, %v1297_v49  ;;  %v568_v1 = vmul.f32 %v1002_v30, %v1303_v52  ;;  %v1016_v61 = vld [vmem:[%s1940_s1 + $0x2d0] sm:$0xff]  ;;  %v1017_v10 = vld [vmem:[%s1940_s1 + $0x2d8] sm:$0xff] }
  0x58   : > { %v562_v20 = vadd.f32 %v559_v43, %v552_v16  ;;  %v569_v21 = vmul.f32 %v1003_v5, %v1394_v38  ;;  %v577_v22 = vmul.f32 %v1004_v13, %v1306_v53  ;;  %v578_v23 = vmul.f32 %v1005_v14, %v1309_v54 }
  0x59   : > { %v570_v28 = vadd.f32 %v567_v8, %v560_v12  ;;  %v571_v29 = vadd.f32 %v568_v1, %v561_v46  ;;  %v579_v34 = vmul.f32 %v1006_v7, %v1402_v45  ;;  %v587_v35 = vmul.f32 %v1007_v17, %v1333_v2  ;;  %v1019_v46 = vld [vmem:[%s1940_s1 + $0x2e8] sm:$0xff] }
  0x5a   : > { %v520_v44 = vrot.slane %v512_v15, 2  ;;  %v572_v51 = vadd.f32 %v569_v21, %v562_v20  ;;  %v588_v56 = vmul.f32 %v1008_v11, %v1336_v3  ;;  %v589_v58 = vmul.f32 %v1009_v19, %v1427_v9  ;;  %v1018_v15 = vld [vmem:[%s1940_s1 + $0x2e0] sm:$0x3f]  ;;  %v1020_v20 = vld [vmem:[%s1940_s1 + $0x2f0] sm:$0xff] }
  0x5b   : > { %v580_v62 = vadd.f32 %v577_v22, %v570_v28  ;;  %v581_v63 = vadd.f32 %v578_v23, %v571_v29  ;;  %v610_v30 = vmul.f32 %v1010_v24, %v1248_v26  ;;  %v611_v6 = vmul.f32 %v1011_v25, %v1251_v27  ;;  %v1022_v25 = vld [vmem:[%s1940_s1 + $0x300] sm:$0xff] }
  0x5c   : > { %v582_v43 = vadd.f32 %v579_v34, %v572_v51  ;;  %v612_v5 = vmul.f32 %v1012_v40, %v1291_v47  ;;  %v617_v13 = vmul.f32 %v1013_v41, %v1259_v31  ;;  %v618_v14 = vmul.f32 %v1014_v42, %v1262_v32  ;;  %v1023_v40 = vld [vmem:[%s1940_s1 + $0x308] sm:$0xff]  ;;  %v1026_v51 = vld [vmem:[%s1940_s1 + $0x320] sm:$0xff] }
  0x5d   : > { %v519_v16 = vsel %vm516_vm1, %v517_v33, %v518_v18  ;;  %v1668_v12 = vadd.f32 %v587_v35, %v580_v62  ;;  %v619_v7 = vmul.f32 %v1015_v60, %v1300_v50  ;;  %v627_v17 = vmul.f32 %v1016_v61, %v1270_v36  ;;  %v1021_v33 = vld [vmem:[%s1940_s1 + $0x2f8] sm:$0x3f]  ;;  %v1027_v61 = vld [vmem:[%s1940_s1 + $0x328] sm:$0x3f] }
  0x5e   : > { %v591_v8 = vadd.f32 %v588_v56, %v581_v63  ;;  %v620_v1 = vadd.f32 %v617_v13, %v610_v30  ;;  %v621_v11 = vadd.f32 %v618_v14, %v611_v6  ;;  %v628_v19 = vmul.f32 %v1017_v10, %v1273_v37  ;;  %v1028_v10 = vld [vmem:[%s1940_s1 + $0x330] sm:$0xff] }
  0x5f   : > { %v445_v21 = vadd.f32 %v1589_v59, %v1584_v55  ;;  %v592_v22 = vadd.f32 %v589_v58, %v582_v43  ;;  %v622_v23 = vadd.f32 %v619_v7, %v612_v5  ;;  %v629_v24 = vmul.f32 %v1018_v15, %v1318_v57  ;;  %v1029_v43 = vld [vmem:[%s1940_s1 + $0x338] sm:$0xff] }
  0x60   : > { %v521_v28 = vsel %vm516_vm1, %v518_v18, %v520_v44  ;;  %v630_v29 = vadd.f32 %v627_v17, %v620_v1  ;;  %v631_v34 = vadd.f32 %v628_v19, %v621_v11  ;;  %v637_v35 = vmul.f32 %v1019_v46, %v1277_v39  ;;  %v1024_v18 = vld [vmem:[%s1940_s1 + $0x310] sm:$0x3f]  ;;  %v1025_v44 = vld [vmem:[%s1940_s1 + $0x318] sm:$0xff]  ;;  %v1030_v1 = vld [vmem:[%s1940_s1 + $0x340] sm:$0x3f] }
  0x61   : > { %v1694_v55 = vadd.f32 %v519_v16, %v1599_v4  ;;  %v632_v59 = vadd.f32 %v629_v24, %v622_v23  ;;  %v638_v41 = vmul.f32 %v1020_v20, %v1294_v48  ;;  %v639_v42 = vmul.f32 %v1021_v33, %v1329_v0  ;;  %v1031_v16 = vld [vmem:[%s1940_s1 + $0x348] sm:$0xff]  ;;  %v1033_v7 = vld [vmem:[%s1940_s1 + $0x358] sm:$0x3f]  ;;  %v1034_v11 = vld [vmem:[%s1940_s1 + $0x360] sm:$0xff] }
  0x62   : > { %v597_v4 = vrot.slane %v1668_v12, 3  ;;  %v598_v56 = vrot.slane %v591_v8, 3  ;;  %v640_v58 = vadd.f32 %v637_v35, %v630_v29  ;;  %v647_v60 = vmul.f32 %v1022_v25, %v1297_v49  ;;  %v1032_v12 = vld [vmem:[%s1940_s1 + $0x350] sm:$0xff]  ;;  %v1035_v19 = vld [vmem:[%s1940_s1 + $0x368] sm:$0xff]  ;;  %v1037_v24 = vld [vmem:[%s1940_s1 + $0x378] sm:$0xff] }
  0x63   : > { %v600_v62 = vrot.slane %v592_v22, 3  ;;  %v641_v63 = vadd.f32 %v638_v41, %v631_v34  ;;  %v642_v30 = vadd.f32 %v639_v42, %v632_v59  ;;  %v648_v6 = vmul.f32 %v1023_v40, %v1303_v52  ;;  %v1036_v23 = vld [vmem:[%s1940_s1 + $0x370] sm:$0x3f]  ;;  %v1038_v25 = vld [vmem:[%s1940_s1 + $0x380] sm:$0xff] }
  0x64   : > { %v649_v5 = vmul.f32 %v1024_v18, %v1394_v38  ;;  %v650_v13 = vadd.f32 %v647_v60, %v640_v58  ;;  %v657_v14 = vmul.f32 %v1025_v44, %v1306_v53  ;;  %v658_v15 = vmul.f32 %v1026_v51, %v1309_v54  ;;  %v1039_v18 = vld [vmem:[%s1940_s1 + $0x388] sm:$0x3f]  ;;  %v1040_v44 = vld [vmem:[%s1940_s1 + $0x390] sm:$0xff]  ;;  %v1041_v60 = vld [vmem:[%s1940_s1 + $0x398] sm:$0xff] }
  0x65   : > { %v525_v17 = vadd.f32 %v521_v28, %v445_v21  ;;  %v651_v46 = vadd.f32 %v648_v6, %v641_v63  ;;  %v659_v8 = vmul.f32 %v1027_v61, %v1402_v45  ;;  %v667_v21 = vmul.f32 %v1028_v10, %v1333_v2  ;;  %v1042_v6 = vld [vmem:[%s1940_s1 + $0x3a0] sm:$0x3f]  ;;  %v1043_v10 = vld [vmem:[%s1940_s1 + $0x3a8] sm:$0xff] }
  0x66   : > { %v652_v20 = vadd.f32 %v649_v5, %v642_v30  ;;  %v660_v33 = vadd.f32 %v657_v14, %v650_v13  ;;  %v668_v22 = vmul.f32 %v1029_v43, %v1336_v3  ;;  %v690_v29 = vmul.f32 %v1031_v16, %v1248_v26 }
  0x67   : > { %v661_v28 = vadd.f32 %v658_v15, %v651_v46  ;;  %v691_v34 = vmul.f32 %v1032_v12, %v1251_v27  ;;  %v692_v35 = vmul.f32 %v1033_v7, %v1291_v47  ;;  %v599_v40 = vsel %vm596_vm2, %v597_v4, %v598_v56  ;;  %v1044_v46 = vld [vmem:[%s1940_s1 + $0x3b0] sm:$0xff] }
  0x68   : > { %v601_v59 = vsel %vm596_vm2, %v598_v56, %v600_v62  ;;  %v697_v41 = vmul.f32 %v1034_v11, %v1259_v31  ;;  %v698_v42 = vmul.f32 %v1035_v19, %v1262_v32  ;;  %v669_v51 = vmul.f32 %v1030_v1, %v1427_v9 }
  0x69   : > { %v699_v58 = vmul.f32 %v1036_v23, %v1300_v50  ;;  %v707_v4 = vmul.f32 %v1037_v24, %v1270_v36  ;;  %v708_v56 = vmul.f32 %v1038_v25, %v1273_v37  ;;  %v662_v61 = vadd.f32 %v659_v8, %v652_v20  ;;  %v1045_v8 = vld [vmem:[%s1940_s1 + $0x3b8] sm:$0x3f]  ;;  %v1046_v20 = vld [vmem:[%s1940_s1 + $0x3c0] sm:$0xff] }
  0x6a   : > { %v1772_v62 = vadd.f32 %v667_v21, %v660_v33  ;;  %v700_v63 = vadd.f32 %v697_v41, %v690_v29  ;;  %v701_v30 = vadd.f32 %v698_v42, %v691_v34  ;;  %v1780_v43 = vadd.f32 %v668_v22, %v661_v28  ;;  %v1047_v33 = vld [vmem:[%s1940_s1 + $0x3c8] sm:$0xff]  ;;  %v1048_v21 = vld [vmem:[%s1940_s1 + $0x3d0] sm:$0x3f]  ;;  %v1049_v25 = vld [vmem:[%s1940_s1 + $0x3d8] sm:$0xff] }
  0x6b   : > { %v702_v5 = vadd.f32 %v699_v58, %v692_v35  ;;  %v709_v13 = vmul.f32 %v1039_v18, %v1318_v57  ;;  %v717_v14 = vmul.f32 %v1040_v44, %v1277_v39  ;;  %v1785_v15 = vadd.f32 %v599_v40, %v1694_v55  ;;  %v1050_v28 = vld [vmem:[%s1940_s1 + $0x3e0] sm:$0xff]  ;;  %v1052_v41 = vld [vmem:[%s1940_s1 + $0x3f0] sm:$0xff]  ;;  %v1053_v58 = vld [vmem:[%s1940_s1 + $0x3f8] sm:$0xff] }
  0x6c   : > { %v710_v16 = vadd.f32 %v707_v4, %v700_v63  ;;  %v711_v12 = vadd.f32 %v708_v56, %v701_v30  ;;  %v718_v7 = vmul.f32 %v1041_v60, %v1294_v48  ;;  %v1794_v1 = vadd.f32 %v601_v59, %v525_v17  ;;  %v1051_v59 = vld [vmem:[%s1940_s1 + $0x3e8] sm:$0x3f]  ;;  %v1054_v4 = vld [vmem:[%s1940_s1 + $0x400] sm:$0x3f]  ;;  %v1056_v30 = vld [vmem:[%s1940_s1 + $0x410] sm:$0xff] }
  0x6d   : > { %v712_v11 = vadd.f32 %v709_v13, %v702_v5  ;;  %v719_v19 = vmul.f32 %v1042_v6, %v1329_v0  ;;  %v727_v55 = vmul.f32 %v1043_v10, %v1297_v49  ;;  %v672_v22 = vadd.f32 %v669_v51, %v662_v61  ;;  %v1055_v63 = vld [vmem:[%s1940_s1 + $0x408] sm:$0xff]  ;;  %v1057_v6 = vld [vmem:[%s1940_s1 + $0x418] sm:$0x3f] }
  0x6e   : > { %v677_v17 = vrot.slane %v1772_v62, 4  ;;  %v720_v23 = vadd.f32 %v717_v14, %v710_v16  ;;  %v721_v24 = vadd.f32 %v718_v7, %v711_v12  ;;  %v678_v29 = vrot.slane %v1780_v43, 4  ;;  %v1058_v14 = vld [vmem:[%s1940_s1 + $0x420] sm:$0xff]  ;;  %v1059_v16 = vld [vmem:[%s1940_s1 + $0x428] sm:$0xff] }
  0x6f   : > { %v722_v34 = vadd.f32 %v719_v19, %v712_v11  ;;  %v728_v35 = vmul.f32 %v1044_v46, %v1303_v52  ;;  %v729_v40 = vmul.f32 %v1045_v8, %v1394_v38  ;;  %v737_v18 = vmul.f32 %v1046_v20, %v1306_v53  ;;  %v1061_v20 = vld [vmem:[%s1940_s1 + $0x438] sm:$0xff] }
  0x70   : > { %v730_v42 = vadd.f32 %v727_v55, %v720_v23  ;;  %v738_v44 = vmul.f32 %v1047_v33, %v1309_v54  ;;  %v739_v51 = vmul.f32 %v1048_v21, %v1402_v45  ;;  %v747_v61 = vmul.f32 %v1049_v25, %v1333_v2  ;;  %v1060_v55 = vld [vmem:[%s1940_s1 + $0x430] sm:$0x3f] }
  0x71   : > { %v731_v56 = vadd.f32 %v728_v35, %v721_v24  ;;  %v732_v60 = vadd.f32 %v729_v40, %v722_v34  ;;  %v748_v62 = vmul.f32 %v1050_v28, %v1336_v3  ;;  %v680_v10 = vrot.slane %v672_v22, 4  ;;  %v1064_v25 = vld [vmem:[%s1940_s1 + $0x450] sm:$0xff] }
  0x72   : > { %v740_v43 = vadd.f32 %v737_v18, %v730_v42  ;;  %v749_v5 = vmul.f32 %v1051_v59, %v1427_v9  ;;  %v770_v13 = vmul.f32 %v1052_v41, %v1248_v26  ;;  %v771_v46 = vmul.f32 %v1053_v58, %v1251_v27  ;;  %v1065_v42 = vld [vmem:[%s1940_s1 + $0x458] sm:$0xff] }
  0x73   : > { %v741_v12 = vadd.f32 %v738_v44, %v731_v56  ;;  %v742_v7 = vadd.f32 %v739_v51, %v732_v60  ;;  %v772_v8 = vmul.f32 %v1054_v4, %v1291_v47  ;;  %v777_v11 = vmul.f32 %v1055_v63, %v1259_v31  ;;  %v1062_v31 = vld [vmem:[%s1940_s1 + $0x440] sm:$0xff]  ;;  %v1071_v56 = vld [vmem:[%s1940_s1 + $0x488] sm:$0xff]  ;;  %v1072_v60 = vld [vmem:[%s1940_s1 + $0x490] sm:$0x3f] }
  0x74   : > { %v778_v19 = vmul.f32 %v1056_v30, %v1262_v32  ;;  %v779_v26 = vmul.f32 %v1057_v6, %v1300_v50  ;;  %v750_v33 = vadd.f32 %v747_v61, %v740_v43  ;;  %v787_v27 = vmul.f32 %v1058_v14, %v1270_v36  ;;  %v1063_v32 = vld [vmem:[%s1940_s1 + $0x448] sm:$0x3f]  ;;  %v1070_v44 = vld [vmem:[%s1940_s1 + $0x480] sm:$0xff] }
  0x75   : > { %v751_v21 = vadd.f32 %v748_v62, %v741_v12  ;;  %v788_v47 = vmul.f32 %v1059_v16, %v1273_v37  ;;  %v752_v50 = vadd.f32 %v749_v5, %v742_v7  ;;  %v780_v22 = vadd.f32 %v777_v11, %v770_v13 }
  0x76   : > { %v781_v23 = vadd.f32 %v778_v19, %v771_v46  ;;  %v782_v24 = vadd.f32 %v779_v26, %v772_v8  ;;  %v679_v36 = vsel %vm676_vm3, %v677_v17, %v678_v29  ;;  %v681_v37 = vsel %vm676_vm3, %v678_v29, %v680_v10  ;;  %v1066_v17 = vld [vmem:[%s1940_s1 + $0x460] sm:$0x3f] }
  0x77   : > { %v789_v28 = vmul.f32 %v1060_v55, %v1318_v57  ;;  %v797_v34 = vmul.f32 %v1061_v20, %v1277_v39  ;;  %v790_v35 = vadd.f32 %v787_v27, %v780_v22  ;;  %v798_v59 = vmul.f32 %v1062_v31, %v1294_v48  ;;  %v1067_v57 = vld [vmem:[%s1940_s1 + $0x468] sm:$0xff]  ;;  %v1068_v48 = vld [vmem:[%s1940_s1 + $0x470] sm:$0xff] }
  0x78   : > { %v791_v40 = vadd.f32 %v788_v47, %v781_v23  ;;  %v799_v41 = vmul.f32 %v1063_v32, %v1329_v0  ;;  %v757_v39 = vrot.slane %v750_v33, 5  ;;  %v807_v18 = vmul.f32 %v1064_v25, %v1297_v49  ;;  %v1069_v0 = vld [vmem:[%s1940_s1 + $0x478] sm:$0x3f] }
  0x79   : > { %v792_v29 = vadd.f32 %v789_v28, %v782_v24  ;;  %v758_v51 = vrot.slane %v751_v21, 5  ;;  %v760_v58 = vrot.slane %v752_v50, 5  ;;  %v800_v49 = vadd.f32 %v797_v34, %v790_v35 }
  0x7a   : > { %v801_v4 = vadd.f32 %v798_v59, %v791_v40  ;;  %v808_v62 = vmul.f32 %v1065_v42, %v1303_v52  ;;  %v809_v63 = vmul.f32 %v1066_v17, %v1394_v38  ;;  %v817_v30 = vmul.f32 %v1067_v57, %v1306_v53 }
  0x7b   : > { %v802_v61 = vadd.f32 %v799_v41, %v792_v29  ;;  %v810_v6 = vadd.f32 %v807_v18, %v800_v49  ;;  %v818_v10 = vmul.f32 %v1068_v48, %v1309_v54  ;;  %v819_v43 = vmul.f32 %v1069_v0, %v1402_v45 }
  0x7c   : > { %v827_v5 = vmul.f32 %v1070_v44, %v1333_v2  ;;  %v811_v13 = vadd.f32 %v808_v62, %v801_v4  ;;  %v828_v16 = vmul.f32 %v1071_v56, %v1336_v3  ;;  %v829_v12 = vmul.f32 %v1072_v60, %v1427_v9 }
  0x7d   : > { %v812_v14 = vadd.f32 %v809_v63, %v802_v61  ;;  %v684_v52 = vadd.f32 %v679_v36, %v1785_v15  ;;  %v685_v53 = vadd.f32 %v681_v37, %v1794_v1  ;;  %v820_v38 = vadd.f32 %v817_v30, %v810_v6 }
  0x7e   : > { %v759_v54 = vsel %vm756_vm4, %v757_v39, %v758_v51  ;;  %v761_v45 = vsel %vm756_vm4, %v758_v51, %v760_v58  ;;  %v821_v7 = vadd.f32 %v818_v10, %v811_v13 }
  0x7f   : > { %v822_v2 = vadd.f32 %v819_v43, %v812_v14  ;;  %v830_v46 = vadd.f32 %v827_v5, %v820_v38  ;;  %v764_v3 = vadd.f32 %v759_v54, %v684_v52  ;;  %v765_v9 = vadd.f32 %v761_v45, %v685_v53 }
  0x80   : > { %v831_v8 = vadd.f32 %v828_v16, %v821_v7 }
  0x81   : > { %v832_v11 = vadd.f32 %v829_v12, %v822_v2  ;;  %v837_v19 = vrot.slane %v830_v46, 6 }
  0x82   : > { %v838_v26 = vrot.slane %v831_v8, 6 }
  0x83   : > { %v840_v55 = vrot.slane %v832_v11, 6 }
  0x84   : > { %v839_v15 = vsel %vm836_vm5, %v837_v19, %v838_v26 }
  0x85   : > { %v841_v1 = vsel %vm836_vm5, %v838_v26, %v840_v55  ;;  %v844_v20 = vadd.f32 %v839_v15, %v764_v3 }
  0x86   : > { %v845_v33 = vadd.f32 %v841_v1, %v765_v9 }
  0x87   : > { %846 = vst [vmem:[%s286_s6] sm:$0xff] %v844_v20 }
  0x88   : > { %847 = vst [vmem:[%s286_s6 + $0x8] sm:$0xff] %v845_v33 }
  0x89 PF: > { %p10_p9 = scmp.ge.s32.totalorder %s1164_s16, 4   ;;  %s1944_s12 = smov %s1121_s13 }
  0x8a   : > { %s1945_s13 = smov %s1173_s19  ;;  %s1946_s14 = smov %s1164_s16 }
  0x8b   :  { %12 = sbr.rel (!%p10_p9) target bundleno = 2 (0x2), region = 159 }

</bundles_post_ra>
